<compile_context>
chip_gen: v7x
topology: tpu7x:2x2x1
jax: 0.10.0
libtpu: 0.0.40
codegen_flags: <defaults>
</compile_context>

<pallas_src>
import functools

import jax
import jax.numpy as jnp
from jax.experimental import pallas as pl
from jax.experimental.pallas import tpu as pltpu

C_FEAT = 2048   # wide_resnet50_2 fc.in_features
LANES = 128


def _round_up(x, m):
    return ((x + m - 1) // m) * m


def _pick_tile_n(n, s, c, itemsize, vmem_block_cap=8 << 20):
    """Images per grid step.

    Cap the feature block at ~vmem_block_cap bytes so the double-buffered
    footprint stays well inside v7x's 32 MiB scoped VMEM default, keep the
    grid extent >= 2 when n >= 2 so both TensorCores get work on v7x, and
    require tile_n | n so every block is full.
    """
    cap = max(1, vmem_block_cap // (s * c * itemsize))
    cap = min(cap, 32, n)
    if n >= 2:
        cap = min(cap, max(1, n // 2))
    for t in range(cap, 0, -1):
        if n % t == 0:
            return t
    return 1


def prepare_cnn_head_params(wfc, bfc, spatial_size):
    """Once-per-weights host preprocessing (hoisted out of the forward path).

    * folds avgpool's 1/S into the fc weight (W' = W / S)
    * pads num_classes up to a full 128-lane block (lane-dense weight/output)
    * precomputes per-class column sums of the *unscaled* W so the per-call
      frame_num fold is an O(num_classes) op rather than O(C * num_classes).

    Returns (w_pad (C, NC_PAD), b_pad (NC_PAD,), wcolsum_pad (NC_PAD,)).
    """
    c, nc = wfc.shape
    ncp = max(LANES, _round_up(nc, LANES))
    w32 = wfc.astype(jnp.float32)
    w_pad = jnp.zeros((c, ncp), jnp.float32).at[:, :nc].set(w32 / float(spatial_size))
    b_pad = jnp.zeros((ncp,), jnp.float32).at[:nc].set(bfc.astype(jnp.float32))
    wcolsum_pad = jnp.zeros((ncp,), jnp.float32).at[:nc].set(jnp.sum(w32, axis=0))
    return w_pad, b_pad, wcolsum_pad


def _cnn_head_kernel(feat_ref, wfc_ref, bfc_ref, out_ref):
    # feat_ref : (TILE_N, S, C)       slab of images, channels on the lane axis
    # wfc_ref  : (C, NC_PAD)          fc weight, pre-scaled by 1/S, resident
    # bfc_ref  : (1, NC_PAD)          fc bias + frame_num * colsum(W), resident
    # out_ref  : (1, TILE_N, NC_PAD)  lane-dense logits block
    x = feat_ref[...].astype(jnp.float32)          # bf16 features upcast to f32
    pooled = jnp.sum(x, axis=1)                    # (TILE_N, C): avgpool (1/S lives in W)
    # dropout(0.2) is identity in eval; frame_num is already folded into bfc_ref.
    # Default MXU precision stays within 1e-3 of the Precision.HIGHEST reference
    # for K = 2048 (asserted in __main__).
    logits = jnp.dot(pooled, wfc_ref[...],
                     preferred_element_type=jnp.float32)   # (TILE_N, NC_PAD)
    out_ref[0] = logits + bfc_ref[...]


def cnn_forward(feat_nhwc, frame_num, w_pad, b_pad, wcolsum_pad, *, num_classes):
    """Head of CNN.forward on top of the layer4 feature map.

    feat_nhwc   : (N, H, W, 2048) channels-last layer4 features (f32 or bf16).
    frame_num   : scalar added to the pooled 2048-d features before the fc.
    w_pad/b_pad/wcolsum_pad : outputs of prepare_cnn_head_params.
    Returns [logits] with logits of shape (N, num_classes) — the module
    returns a list.
    """
    n, h, w, c = feat_nhwc.shape
    s = h * w
    ncp = w_pad.shape[1]
    assert w_pad.shape[0] == c

    feat = feat_nhwc.reshape(n, s, c)              # contiguous (free) reshape

    # (x + frame_num) @ W + b == x @ W + (b + frame_num * W.sum(axis=0)).
    # Column sums are precomputed -> this is an O(num_classes) op per call.
    f = jnp.asarray(frame_num, jnp.float32)
    bfc_eff = (b_pad + f * wcolsum_pad).reshape(1, ncp)

    tile_n = _pick_tile_n(n, s, c, feat.dtype.itemsize)
    n_tiles = n // tile_n

    cost = pl.CostEstimate(
        flops=n * s * c + 2 * n * c * ncp,
        transcendentals=0,
        bytes_accessed=(n * s * c * feat.dtype.itemsize   # feature reads
                        + c * ncp * 4                      # resident weight
                        + ncp * 4                          # bias
                        + n * ncp * 4),                    # logits writes
    )

    out = pl.pallas_call(
        _cnn_head_kernel,
        out_shape=jax.ShapeDtypeStruct((n_tiles, tile_n, ncp), jnp.float32),
        grid=(n_tiles,),
        in_specs=[
            pl.BlockSpec((tile_n, s, c), lambda i: (i, 0, 0)),   # features (pipelined)
            pl.BlockSpec((c, ncp), lambda i: (0, 0)),            # fc weight (resident)
            pl.BlockSpec((1, ncp), lambda i: (0, 0)),            # fc bias (+frame_num)
        ],
        out_specs=pl.BlockSpec((1, tile_n, ncp), lambda i: (i, 0, 0)),
        compiler_params=pltpu.CompilerParams(
            dimension_semantics=("parallel",)),
        cost_estimate=cost,
    )(feat, w_pad, bfc_eff)

    logits = out.reshape(n, ncp)[:, :num_classes]
    return [logits]


def _ref_forward(feat_nhwc, frame_num, wfc, bfc):
    n, h, w, c = feat_nhwc.shape
    pooled = jnp.mean(feat_nhwc.astype(jnp.float32).reshape(n, h * w, c), axis=1)
    x = pooled + jnp.float32(frame_num)            # dropout = identity (eval)
    return (jnp.dot(x, wfc.astype(jnp.float32),
                    precision=jax.lax.Precision.HIGHEST)
            + jnp.reshape(bfc, (1, -1)).astype(jnp.float32))


if __name__ == "__main__":
    key = jax.random.PRNGKey(0)
    num_classes = 8
    N, H, W = 2, 7, 7   # wide_resnet50_2 layer4 spatial size for 224x224 inputs

    k_feat, k_wfc, k_bfc = jax.random.split(key, 3)

    # TODO(synk): the torchvision-pretrained wide_resnet50_2 backbone
    # (conv1..layer4) is checkpoint-dependent and has no clean in-script Pallas
    # equivalent; `feat` stands in for its layer4 output (channels-last).
    feat = jax.random.normal(k_feat, (N, H, W, C_FEAT), jnp.float32)
    frame_num = 7.0   # scalar added to the pooled 2048-d features

    wfc = (jax.random.normal(k_wfc, (C_FEAT, num_classes), jnp.float32)
           / jnp.sqrt(float(C_FEAT)))
    bfc = jax.random.normal(k_bfc, (num_classes,), jnp.float32) * 0.01

    # Once-per-weights preparation (1/S fold, lane padding, column sums) —
    # hoisted out of the per-call path.
    w_pad, b_pad, wcolsum_pad = prepare_cnn_head_params(wfc, bfc, H * W)

    fwd = jax.jit(functools.partial(cnn_forward, num_classes=num_classes))
    (out,) = fwd(feat, jnp.float32(frame_num), w_pad, b_pad, wcolsum_pad)
    out = jax.block_until_ready(out)

    ref = _ref_forward(feat, frame_num, wfc, bfc)
    assert out.shape == (N, num_classes), out.shape
    assert jnp.allclose(out, ref, rtol=1e-3, atol=1e-3), "mismatch vs JAX reference"

    print("KERNEL_OK")
</pallas_src>

<mosaic_0001>
module attributes {stable_mosaic.version = 11 : i64} {
  func.func @_cnn_head_kernel(%arg0: i32, %arg1: memref<1x49x2048xf32, #tpu.memory_space<vmem>>, %arg2: memref<2048x128xf32, #tpu.memory_space<vmem>>, %arg3: memref<1x128xf32, #tpu.memory_space<vmem>>, %arg4: memref<1x1x128xf32, #tpu.memory_space<vmem>>) attributes {dimension_semantics = [#tpu.dimension_semantics<parallel>], iteration_bounds = array<i64: 2>, scalar_prefetch = 0 : i64, scratch_operands = 0 : i64, tpu.core_type = #tpu.core_type<tc>, window_params = [{transform_indices = @transform_0, window_bounds = array<i64: 1, 49, 2048>}, {pipeline_mode = #tpu.pipeline_mode<synchronous>, transform_indices = @transform_1, window_bounds = array<i64: 2048, 128>}, {pipeline_mode = #tpu.pipeline_mode<synchronous>, transform_indices = @transform_2, window_bounds = array<i64: 1, 128>}, {transform_indices = @transform_3, window_bounds = array<i64: 1, 1, 128>}]} {
    %c0 = arith.constant 0 : index
    %c0_0 = arith.constant 0 : index
    %c0_1 = arith.constant 0 : index
    %0 = vector.load %arg1[%c0, %c0_0, %c0_1] : memref<1x49x2048xf32, #tpu.memory_space<vmem>>, vector<1x49x2048xf32>
    %cst = arith.constant dense<0.000000e+00> : vector<1x2048xf32>
    %1 = vector.multi_reduction <add>, %0, %cst [1] : vector<1x49x2048xf32> to vector<1x2048xf32>
    %c0_2 = arith.constant 0 : index
    %c0_3 = arith.constant 0 : index
    %2 = vector.load %arg2[%c0_2, %c0_3] : memref<2048x128xf32, #tpu.memory_space<vmem>>, vector<2048x128xf32>
    %cst_4 = arith.constant dense<0.000000e+00> : vector<1x128xf32>
    %3 = tpu.matmul %1, %2, %cst_4 {dimension_numbers = #tpu.dot_dimension_numbers<[1], [0], [0], [1], [0, 0, 1, 1], [], []>} : vector<1x2048xf32>, vector<2048x128xf32>, vector<1x128xf32> -> vector<1x128xf32>
    %c0_5 = arith.constant 0 : index
    %c0_6 = arith.constant 0 : index
    %4 = vector.load %arg3[%c0_5, %c0_6] : memref<1x128xf32, #tpu.memory_space<vmem>>, vector<1x128xf32>
    %5 = arith.addf %3, %4 : vector<1x128xf32>
    %c0_7 = arith.constant 0 : index
    %c0_8 = arith.constant 0 : index
    %c0_9 = arith.constant 0 : index
    %6 = vector.load %arg4[%c0_7, %c0_8, %c0_9] : memref<1x1x128xf32, #tpu.memory_space<vmem>>, vector<1x1x128xf32>
    %7 = vector.shape_cast %6 : vector<1x1x128xf32> to vector<1x128xf32>
    %8 = vector.shape_cast %5 : vector<1x128xf32> to vector<1x1x128xf32>
    tpu.vector_store %arg4[%c0_7, %c0_8, %c0_9], %8 {strides = array<i32>} : memref<1x1x128xf32, #tpu.memory_space<vmem>>, vector<1x1x128xf32>,
    return
  }
  func.func @transform_0(%arg0: i32) -> (i32, i32, i32) {
    %c0_i32 = arith.constant 0 : i32
    %c0_i32_0 = arith.constant 0 : i32
    %c0_i32_1 = arith.constant 0 : i32
    return %arg0, %c0_i32, %c0_i32_0 : i32, i32, i32
  }
  func.func @transform_1(%arg0: i32) -> (i32, i32) {
    %c0_i32 = arith.constant 0 : i32
    %c0_i32_0 = arith.constant 0 : i32
    %c0_i32_1 = arith.constant 0 : i32
    return %c0_i32, %c0_i32_0 : i32, i32
  }
  func.func @transform_2(%arg0: i32) -> (i32, i32) {
    %c0_i32 = arith.constant 0 : i32
    %c0_i32_0 = arith.constant 0 : i32
    %c0_i32_1 = arith.constant 0 : i32
    return %c0_i32, %c0_i32_0 : i32, i32
  }
  func.func @transform_3(%arg0: i32) -> (i32, i32, i32) {
    %c0_i32 = arith.constant 0 : i32
    %c0_i32_0 = arith.constant 0 : i32
    %c0_i32_1 = arith.constant 0 : i32
    return %arg0, %c0_i32, %c0_i32_0 : i32, i32, i32
  }
}

</mosaic_0001>

<bundles_post_ra>
// kernel: cnn_forward.1
= control target key start
LH: loop header
LB: loop body
LE: loop exit
PB: predicated region body
PF: predicated region fallthrough
CT: control target
= control target key end

     0   :  { %8 = vsyncpa [#allocation3], 0  ;;  %s3164_s0 = inlined_call_operand.vmem [shape: f32[2,49,2048], index: 0, kind: input, shape index: {}]   ;;  %s3165_s1 = inlined_call_operand.vmem [shape: f32[2048,128], index: 1, kind: input, shape index: {}]   ;;  %s3166_s2 = inlined_call_operand.vmem [shape: f32[1,128], index: 2, kind: input, shape index: {}]   ;;  %s3167_s3 = inlined_call_operand.hbm [shape: f32[2,1,128], index: 3, kind: output, shape index: {}]  }
   0x1   :  { %10 = vsyncpa [#allocation3 + $0x1], 0  ;;  %s2044_s12 = smov 0   ;;  %s2046_s13 = smov 0  }
   0x2   :  { %s2048_s14 = smov 0   ;;  %s2050_s15 = smov 0  }
   0x3 LB: > { %s2065_s16 = sadd.s32 4294967295, %s2021_s15   ;;  %s1375_s17 = sadd.s32 4294967294, %s2021_s15   ;;  %s2021_s15 = sphi %s2050_s15, %s3173_s15   ;;  %s2017_s14 = sphi %s2048_s14, %s3172_s14   ;;  %s2013_s13 = sphi %s2046_s13, %s3171_s13   ;;  %s2009_s12 = sphi %s2044_s12, %s3170_s12  }
   0x4   : > { %s2069_s18 = sadd.s32 1, %s2021_s15   ;;  %s91_s19 = sadd.s32 1, %s2017_s14 }
   0x5   : > { %s88_s20 = ssub.s32 %s2021_s15, %s2069_s18  ;;  %p101_p0 = scmp.ne.s32.totalorder %s2017_s14, %s2013_s13 }
   0x6   : > { %p89_p1 = scmp.eq.s32.totalorder %s88_s20, 0  ;;  %p102_p2 = scmp.eq.s32.totalorder %s2065_s16, 1 }
   0x7   : > { %p107_p3 = scmp.ne.s32.totalorder %s2013_s13, %s2009_s12  ;;  %p108_p4 = scmp.eq.s32.totalorder %s1375_s17, 1 }
   0x8   : > { %s2080_s21 = scalar_select %p89_p1, %s2017_s14, %s91_s19  }
   0x9   : > { %p2082_p5 = por %p102_p2, %p101_p0  ;;  %p2086_p6 = por %p108_p4, %p107_p3 }
   0xa   : > { %p1378_p7 = scmp.ge.s32.totalorder %s2021_s15, 1  ;;  %p140_p8 = scmp.lt.s32.totalorder %s2021_s15, 3 }
   0xc   : > { %p141_p9 = pnand %p1378_p7, %p140_p8 }
   0xd   : > { %v505_v0 = vld [vmem:[%s3165_s1 + $0x80] sm:$0xff] (!%p141_p9)  ;;  %v506_v1 = vld [vmem:[%s3165_s1 + $0x88] sm:$0xff] (!%p141_p9)  ;;  %v507_v11 = vld [vmem:[%s3165_s1 + $0x90] sm:$0xff] (!%p141_p9)  ;;  %p163_p10 = scmp.lt.s32.totalorder (!%p141_p9), %s2065_s16, 1  ;;  %vm285_vm0 = vcmask (!%p141_p9), 1040384   ;;  %s161_s26 = sand.u32 (!%p141_p9), 1, %s2013_s13  }
   0xe   : > { %144 = sbr.rel (%p141_p9) target bundleno = 393 (0x189), region = 32  ;;  %v489_v2 = vld [vmem:[%s3165_s1] sm:$0xff] (!%p141_p9)  ;;  %v1663_v3 = vpack.c.bf16 (!%p141_p9), %v506_v1, %v505_v0  ;;  %v490_v4 = vld [vmem:[%s3165_s1 + $0x8] sm:$0xff] (!%p141_p9)  ;;  %v508_v13 = vld [vmem:[%s3165_s1 + $0x98] sm:$0xff] (!%p141_p9)  ;;  %s1380_s27 = sshll.u32 (!%p141_p9), %s2065_s16, 4 }
   0xf   : > { %v537_v5 = vld [vmem:[%s3165_s1 + $0x180] sm:$0xff] (!%p141_p9)  ;;  %v538_v6 = vld [vmem:[%s3165_s1 + $0x188] sm:$0xff] (!%p141_p9)  ;;  %v1665_v7 = vpack.c.bf16 (!%p141_p9), %v490_v4, %v489_v2  ;;  %v491_v14 = vld [vmem:[%s3165_s1 + $0x10] sm:$0xff] (!%p141_p9)  ;;  %v1667_v16 = vpack.c.bf16 (!%p141_p9), %v508_v13, %v507_v11  ;;  %s3122_s30 = scalar_lea.hbm (!%p141_p9), %s3167_s3, %s1380_s27  ;;  %s1308_s4 = scalar_lea.sflag (!%p141_p9), [#allocation3], %s161_s26 }
  0x10   : > { %v1695_v8 = vpack.c.bf16 (!%p141_p9), %v538_v6, %v537_v5  ;;  %v521_v9 = vld [vmem:[%s3165_s1 + $0x100] sm:$0xff] (!%p141_p9)  ;;  %v522_v10 = vld [vmem:[%s3165_s1 + $0x108] sm:$0xff] (!%p141_p9)  ;;  %1664 = vmatprep.subr.bf16.mxu0 (!%p141_p9), %v1663_v3  ;;  %v492_v15 = vld [vmem:[%s3165_s1 + $0x18] sm:$0xff] (!%p141_p9) }
  0x11   : > { %v1697_v12 = vpack.c.bf16 (!%p141_p9), %v522_v10, %v521_v9  ;;  %1666 = vmatpush3.bf16.msra.mxu0 (!%p141_p9), %v1665_v7  ;;  %v1669_v17 = vpack.c.bf16 (!%p141_p9), %v492_v15, %v491_v14  ;;  %v539_v18 = vld [vmem:[%s3165_s1 + $0x190] sm:$0xff] (!%p141_p9)  ;;  %v540_v19 = vld [vmem:[%s3165_s1 + $0x198] sm:$0xff] (!%p141_p9)  ;;  %v509_v23 = vld [vmem:[%s3165_s1 + $0xa0] sm:$0xff] (!%p141_p9) }
  0x12   : > { %1696 = vmatprep.subr.bf16.mxu1 (!%p141_p9), %v1695_v8  ;;  %v523_v20 = vld [vmem:[%s3165_s1 + $0x110] sm:$0xff] (!%p141_p9)  ;;  %v1699_v21 = vpack.c.bf16 (!%p141_p9), %v540_v19, %v539_v18  ;;  %v524_v22 = vld [vmem:[%s3165_s1 + $0x118] sm:$0xff] (!%p141_p9)  ;;  %v510_v24 = vld [vmem:[%s3165_s1 + $0xa8] sm:$0xff] (!%p141_p9)  ;;  %1668 = vmatprep.subr.bf16.mxu0 (!%p141_p9), %v1667_v16 }
  0x13   : > { %1698 = vmatpush3.bf16.msra.mxu1 (!%p141_p9), %v1697_v12  ;;  %v1701_v25 = vpack.c.bf16 (!%p141_p9), %v524_v22, %v523_v20  ;;  %v1671_v26 = vpack.c.bf16 (!%p141_p9), %v510_v24, %v509_v23  ;;  %v493_v27 = vld [vmem:[%s3165_s1 + $0x20] sm:$0xff] (!%p141_p9)  ;;  %v494_v28 = vld [vmem:[%s3165_s1 + $0x28] sm:$0xff] (!%p141_p9)  ;;  %v511_v35 = vld [vmem:[%s3165_s1 + $0xb0] sm:$0xff] (!%p141_p9) }
  0x14   : > { %v541_v29 = vld [vmem:[%s3165_s1 + $0x1a0] sm:$0xff] (!%p141_p9)  ;;  %1700 = vmatprep.subr.bf16.mxu1 (!%p141_p9), %v1699_v21  ;;  %v542_v30 = vld [vmem:[%s3165_s1 + $0x1a8] sm:$0xff] (!%p141_p9)  ;;  %v1673_v33 = vpack.c.bf16 (!%p141_p9), %v494_v28, %v493_v27  ;;  %v512_v36 = vld [vmem:[%s3165_s1 + $0xb8] sm:$0xff] (!%p141_p9) }
  0x15   : > { %v525_v31 = vld [vmem:[%s3165_s1 + $0x120] sm:$0xff]  ;;  %v526_v32 = vld [vmem:[%s3165_s1 + $0x128] sm:$0xff]  ;;  %1670 = vmatpush3.bf16.msra.mxu0 %v1669_v17  ;;  %v1703_v34 = vpack.c.bf16 %v542_v30, %v541_v29  ;;  %v495_v37 = vld [vmem:[%s3165_s1 + $0x30] sm:$0xff]  ;;  %v1675_v39 = vpack.c.bf16 %v512_v36, %v511_v35  ;;  %s2195_s9 = scalar_select %p163_p10, %s2065_s16, 1 }
  0x16   : > { %1672 = vmatprep.subr.bf16.mxu0 %v1671_v26  ;;  %v1705_v38 = vpack.c.bf16 %v526_v32, %v525_v31  ;;  %v496_v40 = vld [vmem:[%s3165_s1 + $0x38] sm:$0xff]  ;;  %v543_v41 = vld [vmem:[%s3165_s1 + $0x1b0] sm:$0xff]  ;;  %v513_v46 = vld [vmem:[%s3165_s1 + $0xc0] sm:$0xff]  ;;  %s2023_s16 = smov [#allocation2]  }
  0x17   : > { %1702 = vmatpush3.bf16.msra.mxu1 %v1701_v25  ;;  %v544_v42 = vld [vmem:[%s3165_s1 + $0x1b8] sm:$0xff]  ;;  %v527_v44 = vld [vmem:[%s3165_s1 + $0x130] sm:$0xff]  ;;  %v514_v47 = vld [vmem:[%s3165_s1 + $0xc8] sm:$0xff]  ;;  %v1677_v48 = vpack.c.bf16 %v496_v40, %v495_v37  ;;  %s1919_s11 = smul.u32 896, %s2195_s9  ;;  %s162_s9 = scalar_lea.vmem [#allocation2], %s161_s26 }
  0x18   : > { %1704 = vmatprep.subr.bf16.mxu1 %v1703_v34  ;;  %v1707_v43 = vpack.c.bf16 %v544_v42, %v543_v41  ;;  %v528_v45 = vld [vmem:[%s3165_s1 + $0x138] sm:$0xff]  ;;  %v545_v49 = vld [vmem:[%s3165_s1 + $0x1c0] sm:$0xff]  ;;  %v546_v50 = vld [vmem:[%s3165_s1 + $0x1c8] sm:$0xff]  ;;  %v1679_v52 = vpack.c.bf16 %v514_v47, %v513_v46  ;;  %s1320_s28 = sshll.u32 %s162_s9, 4  ;;  %s1963_s6 = sshll.u32 %s2023_s16, 4  ;;  %s3124_s28 = int_to_ptr.vmem [resolvable:$true] %s1320_s28  ;;  %s1964_s6 = int_to_ptr.vmem [resolvable:$false] %s1963_s6 }
  0x19   : > { %1674 = vmatpush3.bf16.msra.mxu0 %v1673_v33  ;;  %v1709_v51 = vpack.c.bf16 %v528_v45, %v527_v44  ;;  %v497_v53 = vld [vmem:[%s3165_s1 + $0x40] sm:$0xff]  ;;  %v498_v54 = vld [vmem:[%s3165_s1 + $0x48] sm:$0xff]  ;;  %v1711_v56 = vpack.c.bf16 %v546_v50, %v545_v49  ;;  %v515_v58 = vld [vmem:[%s3165_s1 + $0xd0] sm:$0xff]  ;;  %s2252_s19 = scalar_lea.vmem %s3164_s0, %s1919_s11  ;;  %s1959_s5 = scalar_lea.vmem %s3124_s28, 16 }
  0x1a   : > { %1676 = vmatprep.subr.bf16.mxu0 %v1675_v39  ;;  %v529_v55 = vld [vmem:[%s3165_s1 + $0x140] sm:$0xff]  ;;  %v530_v57 = vld [vmem:[%s3165_s1 + $0x148] sm:$0xff]  ;;  %v516_v59 = vld [vmem:[%s3165_s1 + $0xd8] sm:$0xff]  ;;  %v1681_v62 = vpack.c.bf16 %v498_v54, %v497_v53  ;;  %p1960_p11 = scmp.ne.s32.totalorder %s3124_s28, %s1959_s5  ;;  %p1966_p0 = scmp.lt.s32.totalorder %s3124_s28, %s1964_s6 }
  0x1b   : > { %1706 = vmatpush3.bf16.msra.mxu1 %v1705_v38  ;;  %v547_v60 = vld [vmem:[%s3165_s1 + $0x1d0] sm:$0xff]  ;;  %v548_v61 = vld [vmem:[%s3165_s1 + $0x1d8] sm:$0xff]  ;;  %v1713_v63 = vpack.c.bf16 %v530_v57, %v529_v55  ;;  %v1683_v0 = vpack.c.bf16 %v516_v59, %v515_v58  ;;  %v517_v6 = vld [vmem:[%s3165_s1 + $0xe0] sm:$0xff] }
  0x1c   : > { %1708 = vmatprep.subr.bf16.mxu1 %v1707_v43  ;;  %v499_v1 = vld [vmem:[%s3165_s1 + $0x50] sm:$0xff]  ;;  %v500_v2 = vld [vmem:[%s3165_s1 + $0x58] sm:$0xff]  ;;  %v1715_v4 = vpack.c.bf16 %v548_v61, %v547_v60  ;;  %v518_v7 = vld [vmem:[%s3165_s1 + $0xe8] sm:$0xff]  ;;  %p1961_p12 = pnand %p1960_p11, %p2082_p5 }
  0x1d   : > { %1678 = vmatpush3.bf16.msra.mxu0 %v1677_v48  ;;  %v531_v3 = vld [vmem:[%s3165_s1 + $0x150] sm:$0xff]  ;;  %v532_v5 = vld [vmem:[%s3165_s1 + $0x158] sm:$0xff]  ;;  %v501_v8 = vld [vmem:[%s3165_s1 + $0x60] sm:$0xff]  ;;  %v1685_v11 = vpack.c.bf16 %v500_v2, %v499_v1  ;;  %v1687_v16 = vpack.c.bf16 %v518_v7, %v517_v6 }
  0x1e   : > { %1680 = vmatprep.subr.bf16.mxu0 %v1679_v52  ;;  %v549_v9 = vld [vmem:[%s3165_s1 + $0x1e0] sm:$0xff]  ;;  %v550_v10 = vld [vmem:[%s3165_s1 + $0x1e8] sm:$0xff]  ;;  %v1717_v15 = vpack.c.bf16 %v532_v5, %v531_v3  ;;  %v519_v17 = vld [vmem:[%s3165_s1 + $0xf0] sm:$0xff]  ;;  %p1962_p13 = pneg %p1961_p12 }
  0x1f   : > { %1710 = vmatpush3.bf16.msra.mxu1 %v1709_v51  ;;  %v502_v12 = vld [vmem:[%s3165_s1 + $0x68] sm:$0xff]  ;;  %v533_v13 = vld [vmem:[%s3165_s1 + $0x160] sm:$0xff]  ;;  %v1719_v20 = vpack.c.bf16 %v550_v10, %v549_v9  ;;  %v520_v21 = vld [vmem:[%s3165_s1 + $0xf8] sm:$0xff] }
  0x20   : > { %1712 = vmatprep.subr.bf16.mxu1 %v1711_v56  ;;  %v534_v14 = vld [vmem:[%s3165_s1 + $0x168] sm:$0xff]  ;;  %v551_v22 = vld [vmem:[%s3165_s1 + $0x1f0] sm:$0xff]  ;;  %v504_v26 = vld [vmem:[%s3165_s1 + $0x78] sm:$0xff]  ;;  %v1689_v30 = vpack.c.bf16 %v502_v12, %v501_v8  ;;  %v1691_v37 = vpack.c.bf16 %v520_v21, %v519_v17 }
  0x21   : > { %1682 = vmatpush3.bf16.msra.mxu0 %v1681_v62  ;;  %v169_v18 = vld [vmem:[%s2252_s19 + $0x8] sm:$0xff]  ;;  %v503_v25 = vld [vmem:[%s3165_s1 + $0x70] sm:$0xff]  ;;  %v552_v27 = vld [vmem:[%s3165_s1 + $0x1f8] sm:$0xff]  ;;  %v1721_v36 = vpack.c.bf16 %v534_v14, %v533_v13 }
  0x22   : > { %1684 = vmatprep.subr.bf16.mxu0 %v1683_v0  ;;  %v185_v19 = vld [vmem:[%s2252_s19 + $0x88] sm:$0xff]  ;;  %v168_v29 = vld [vmem:[%s2252_s19] sm:$0xff]  ;;  %v535_v31 = vld [vmem:[%s3165_s1 + $0x170] sm:$0xff]  ;;  %v1723_v42 = vpack.c.bf16 %v552_v27, %v551_v22  ;;  %v1693_v51 = vpack.c.bf16 %v504_v26, %v503_v25 }
  0x23   : > { %1714 = vmatpush3.bf16.msra.mxu1 %v1713_v63  ;;  %v201_v23 = vld [vmem:[%s2252_s19 + $0x108] sm:$0xff]  ;;  %v294_v24 = vadd.f32 %v185_v19, %v169_v18  ;;  %v536_v32 = vld [vmem:[%s3165_s1 + $0x178] sm:$0xff]  ;;  %v184_v34 = vld [vmem:[%s2252_s19 + $0x80] sm:$0xff] }
  0x24   : > { %1716 = vmatprep.subr.bf16.mxu1 %v1715_v4  ;;  %v217_v28 = vld [vmem:[%s2252_s19 + $0x188] sm:$0xff]  ;;  %v200_v35 = vld [vmem:[%s2252_s19 + $0x100] sm:$0xff]  ;;  %v280_v41 = vadd.f32 %v184_v34, %v168_v29  ;;  %v171_v46 = vld [vmem:[%s2252_s19 + $0x18] sm:$0xff]  ;;  %v1725_v56 = vpack.c.bf16 %v536_v32, %v535_v31 }
  0x25   : > { %1686 = vmatpush3.bf16.msra.mxu0 %v1685_v11  ;;  %v295_v33 = vadd.f32 %v294_v24, %v201_v23  ;;  %v233_v38 = vld [vmem:[%s2252_s19 + $0x208] sm:$0xff]  ;;  %v216_v40 = vld [vmem:[%s2252_s19 + $0x180] sm:$0xff]  ;;  %v187_v49 = vld [vmem:[%s2252_s19 + $0x98] sm:$0xff] }
  0x26   : > { %1688 = vmatprep.subr.bf16.mxu0 %v1687_v16  ;;  %v265_v39 = vld [vmem:[%s2252_s19 + $0x308] sm:$0x1]  ;;  %v569_v44 = vld [vmem:[%s3165_s1 + $0x280] sm:$0xff]  ;;  %v281_v48 = vadd.f32 %v280_v41, %v200_v35  ;;  %v203_v50 = vld [vmem:[%s2252_s19 + $0x118] sm:$0xff]  ;;  %v320_v55 = vadd.f32 %v187_v49, %v171_v46 }
  0x27   : > { %1718 = vmatpush3.bf16.msra.mxu1 %v1717_v15  ;;  %v296_v43 = vadd.f32 %v295_v33, %v217_v28  ;;  %v570_v45 = vld [vmem:[%s3165_s1 + $0x288] sm:$0xff]  ;;  %v232_v53 = vld [vmem:[%s2252_s19 + $0x200] sm:$0xff]  ;;  %v299_v57 = vsel %vm285_vm0, %v265_v39, 0.0  ;;  %v219_v61 = vld [vmem:[%s2252_s19 + $0x198] sm:$0xff] }
  0x28   : > { %1720 = vmatprep.subr.bf16.mxu1 %v1719_v20  ;;  %v249_v47 = vld [vmem:[%s2252_s19 + $0x288] sm:$0xff]  ;;  %v248_v54 = vld [vmem:[%s2252_s19 + $0x280] sm:$0xff]  ;;  %v282_v59 = vadd.f32 %v281_v48, %v216_v40  ;;  %v1727_v60 = vpack.c.bf16 %v570_v45, %v569_v44  ;;  %v321_v0 = vadd.f32 %v320_v55, %v203_v50  ;;  %v170_v2 = vld [vmem:[%s2252_s19 + $0x10] sm:$0xff] }
  0x29   : > { %1690 = vmatpush3.bf16.msra.mxu0 %v1689_v30  ;;  %v297_v52 = vadd.f32 %v296_v43, %v233_v38  ;;  %v264_v58 = vld [vmem:[%s2252_s19 + $0x300] sm:$0x1]  ;;  %v602_v1 = vld [vmem:[%s3165_s1 + $0x388] sm:$0xff]  ;;  %v186_v3 = vld [vmem:[%s2252_s19 + $0x90] sm:$0xff] }
  0x2a   : > { %1692 = vmatprep.subr.bf16.mxu0 %v1691_v37  ;;  %v601_v62 = vld [vmem:[%s3165_s1 + $0x380] sm:$0xff]  ;;  %v283_v4 = vadd.f32 %v282_v59, %v232_v53  ;;  %v235_v5 = vld [vmem:[%s2252_s19 + $0x218] sm:$0xff]  ;;  %v202_v7 = vld [vmem:[%s2252_s19 + $0x110] sm:$0xff]  ;;  %v307_v8 = vadd.f32 %v186_v3, %v170_v2  ;;  %v286_v10 = vsel %vm285_vm0, %v264_v58, 0.0  ;;  %v322_v12 = vadd.f32 %v321_v0, %v219_v61 }
  0x2b   : > { %1722 = vmatpush3.bf16.msra.mxu1 %v1721_v36  ;;  %v298_v63 = vadd.f32 %v297_v52, %v249_v47  ;;  %v1759_v6 = vpack.c.bf16 %v602_v1, %v601_v62  ;;  %v267_v11 = vld [vmem:[%s2252_s19 + $0x318] sm:$0x1]  ;;  %v218_v13 = vld [vmem:[%s2252_s19 + $0x190] sm:$0xff]  ;;  %v553_v41 = vld [vmem:[%s3165_s1 + $0x200] sm:$0xff] }
  0x2c   : > { %1724 = vmatprep.subr.bf16.mxu1 %v1723_v42  ;;  %v284_v14 = vadd.f32 %v283_v4, %v248_v54  ;;  %v251_v15 = vld [vmem:[%s2252_s19 + $0x298] sm:$0xff]  ;;  %v308_v16 = vadd.f32 %v307_v8, %v202_v7  ;;  %v323_v18 = vadd.f32 %v322_v12, %v235_v5  ;;  %v234_v19 = vld [vmem:[%s2252_s19 + $0x210] sm:$0xff]  ;;  %v325_v21 = vsel %vm285_vm0, %v267_v11, 0.0  ;;  %v554_v42 = vld [vmem:[%s3165_s1 + $0x208] sm:$0xff] }
  0x2d   : > { %1694 = vmatpush3.bf16.msra.mxu0 %v1693_v51  ;;  %v300_v9 = vadd.f32 %v299_v57, %v298_v63  ;;  %v266_v22 = vld [vmem:[%s2252_s19 + $0x310] sm:$0x1]  ;;  %v572_v47 = vld [vmem:[%s3165_s1 + $0x298] sm:$0xff]  ;;  %v1729_v51 = vpack.c.bf16 %v554_v42, %v553_v41  ;;  %v573_v58 = vld [vmem:[%s3165_s1 + $0x2a0] sm:$0xff] }
  0x2e   : > { %1728 = vmatprep.subr.bf16.mxu0 %v1727_v60  ;;  %v287_v20 = vadd.f32 %v286_v10, %v284_v14  ;;  %v309_v23 = vadd.f32 %v308_v16, %v218_v13  ;;  %v324_v25 = vadd.f32 %v323_v18, %v251_v15  ;;  %v250_v26 = vld [vmem:[%s2252_s19 + $0x290] sm:$0xff]  ;;  %v312_v31 = vsel %vm285_vm0, %v266_v22, 0.0  ;;  %v574_v59 = vld [vmem:[%s3165_s1 + $0x2a8] sm:$0xff]  ;;  %v585_v61 = vld [vmem:[%s3165_s1 + $0x300] sm:$0xff] }
  0x2f   : > { %1726 = vmatpush3.bf16.msra.mxu1 %v1725_v56  ;;  %v301_v17 = vrot.slane %v300_v9, 4  ;;  %v571_v46 = vld [vmem:[%s3165_s1 + $0x290] sm:$0xff]  ;;  %v556_v56 = vld [vmem:[%s3165_s1 + $0x218] sm:$0xff]  ;;  %v586_v62 = vld [vmem:[%s3165_s1 + $0x308] sm:$0xff]  ;;  %v1735_v7 = vpack.c.bf16 %v574_v59, %v573_v58 }
  0x30   : > { %1760 = vmatprep.subr.bf16.mxu1 %v1759_v6  ;;  %v288_v27 = vrot.slane %v287_v20, 4  ;;  %v310_v28 = vadd.f32 %v309_v23, %v234_v19  ;;  %v326_v30 = vadd.f32 %v325_v21, %v324_v25  ;;  %v1731_v54 = vpack.c.bf16 %v572_v47, %v571_v46  ;;  %v555_v55 = vld [vmem:[%s3165_s1 + $0x210] sm:$0xff]  ;;  %v604_v2 = vld [vmem:[%s3165_s1 + $0x398] sm:$0xff]  ;;  %v557_v3 = vld [vmem:[%s3165_s1 + $0x220] sm:$0xff] }
  0x31   : > { %v302_v24 = vadd.f32 %v301_v17, %v300_v9  ;;  %v1733_v0 = vpack.c.bf16 %v556_v56, %v555_v55  ;;  %v603_v1 = vld [vmem:[%s3165_s1 + $0x390] sm:$0xff]  ;;  %v588_v6 = vld [vmem:[%s3165_s1 + $0x318] sm:$0xff]  ;;  %v558_v8 = vld [vmem:[%s3165_s1 + $0x228] sm:$0xff]  ;;  %v1761_v11 = vpack.c.bf16 %v586_v62, %v585_v61 }
  0x32   : > { %v289_v32 = vadd.f32 %v288_v27, %v287_v20  ;;  %v311_v33 = vadd.f32 %v310_v28, %v250_v26  ;;  %v327_v35 = vrot.slane %v326_v30, 4  ;;  %v2382_v5 = vld [vmem:[%s3165_s1 + $0x310] sm:$0xff]  ;;  %v576_v10 = vld [vmem:[%s3165_s1 + $0x2b8] sm:$0xff]  ;;  %v173_v12 = vld [vmem:[%s2252_s19 + $0x28] sm:$0xff]  ;;  %v1763_v16 = vpack.c.bf16 %v604_v2, %v603_v1 }
  0x33   : > { %v303_v29 = vrot.slane %v302_v24, 2  ;;  %v575_v9 = vld [vmem:[%s3165_s1 + $0x2b0] sm:$0xff]  ;;  %v189_v13 = vld [vmem:[%s2252_s19 + $0xa8] sm:$0xff]  ;;  %v605_v17 = vld [vmem:[%s3165_s1 + $0x3a0] sm:$0xff]  ;;  %v1737_v21 = vpack.c.bf16 %v558_v8, %v557_v3 }
  0x34   : > { %v290_v36 = vrot.slane %v289_v32, 2  ;;  %v313_v37 = vadd.f32 %v312_v31, %v311_v33  ;;  %v328_v39 = vadd.f32 %v327_v35, %v326_v30  ;;  %v205_v14 = vld [vmem:[%s2252_s19 + $0x128] sm:$0xff]  ;;  %v2408_v19 = vld [vmem:[%s3165_s1 + $0x230] sm:$0xff]  ;;  %v346_v20 = vadd.f32 %v189_v13, %v173_v12  ;;  %v172_v23 = vld [vmem:[%s2252_s19 + $0x20] sm:$0xff] }
  0x35   : > { %v304_v34 = vadd.f32 %v303_v29, %v302_v24  ;;  %v606_v18 = vld [vmem:[%s3165_s1 + $0x3a8] sm:$0xff]  ;;  %v188_v24 = vld [vmem:[%s2252_s19 + $0xa0] sm:$0xff]  ;;  %v1739_v27 = vpack.c.bf16 %v576_v10, %v575_v9  ;;  %v560_v28 = vld [vmem:[%s3165_s1 + $0x238] sm:$0xff]  ;;  %v1765_v33 = vpack.c.bf16 %v588_v6, %v2382_v5 }
  0x36   : > { %v291_v40 = vadd.f32 %v290_v36, %v289_v32  ;;  %v314_v43 = vrot.slane %v313_v37, 4  ;;  %v329_v45 = vrot.slane %v328_v39, 2  ;;  %v221_v22 = vld [vmem:[%s2252_s19 + $0x1a8] sm:$0xff]  ;;  %v2416_v25 = vld [vmem:[%s3165_s1 + $0x320] sm:$0xff]  ;;  %v347_v30 = vadd.f32 %v346_v20, %v205_v14  ;;  %v2439_v35 = vld [vmem:[%s3165_s1 + $0x3b8] sm:$0xff] }
  0x37   : > { %v305_v38 = vrot.slane %v304_v34, 1  ;;  %v2421_v26 = vld [vmem:[%s3165_s1 + $0x328] sm:$0xff]  ;;  %v577_v29 = vld [vmem:[%s3165_s1 + $0x2c0] sm:$0xff]  ;;  %v333_v32 = vadd.f32 %v188_v24, %v172_v23  ;;  %v191_v46 = vld [vmem:[%s2252_s19 + $0xb8] sm:$0xff]  ;;  %v1741_v47 = vpack.c.bf16 %v560_v28, %v2408_v19 }
  0x38   : > { %v292_v48 = vrot.slane %v291_v40, 1  ;;  %v315_v49 = vadd.f32 %v314_v43, %v313_v37  ;;  %v330_v50 = vadd.f32 %v329_v45, %v328_v39  ;;  %v204_v31 = vld [vmem:[%s2252_s19 + $0x120] sm:$0xff]  ;;  %v578_v36 = vld [vmem:[%s3165_s1 + $0x2c8] sm:$0xff]  ;;  %v1767_v39 = vpack.c.bf16 %v606_v18, %v605_v17  ;;  %v175_v45 = vld [vmem:[%s2252_s19 + $0x38] sm:$0xff] }
  0x39   : > { %v306_v44 = vadd.f32 %v305_v38, %v304_v34  ;;  %v2434_v34 = vld [vmem:[%s3165_s1 + $0x3b0] sm:$0xff]  ;;  %v237_v37 = vld [vmem:[%s2252_s19 + $0x228] sm:$0xff]  ;;  %v220_v38 = vld [vmem:[%s2252_s19 + $0x1a0] sm:$0xff]  ;;  %v348_v43 = vadd.f32 %v347_v30, %v221_v22 }
  0x3a   : > { %v293_v52 = vadd.f32 %v292_v48, %v291_v40  ;;  %v316_v53 = vrot.slane %v315_v49, 2  ;;  %v331_v57 = vrot.slane %v330_v50, 1  ;;  %v2449_v40 = vld [vmem:[%s3165_s1 + $0x240] sm:$0xff]  ;;  %v2454_v41 = vld [vmem:[%s3165_s1 + $0x248] sm:$0xff]  ;;  %v579_v55 = vld [vmem:[%s3165_s1 + $0x2d0] sm:$0xff]  ;;  %v1771_v3 = vpack.c.bf16 %v2439_v35, %v2434_v34 }
  0x3b   : > { %810 = vmatprep.mubr.f32.mxu0 %v306_v44  ;;  %v269_v42 = vld [vmem:[%s2252_s19 + $0x328] sm:$0x1]  ;;  %v334_v44 = vadd.f32 %v333_v32, %v204_v31  ;;  %v349_v56 = vadd.f32 %v348_v43, %v237_v37  ;;  %v223_v59 = vld [vmem:[%s2252_s19 + $0x1b8] sm:$0xff]  ;;  %v609_v61 = vld [vmem:[%s3165_s1 + $0x3c0] sm:$0xff]  ;;  %v1745_v9 = vpack.c.bf16 %v2454_v41, %v2449_v40 }
  0x3c   : > { %811 = vmatmul.mubr.f32.vlgmr.msra.gmra.mrb[0].mxu0 %v293_v52  ;;  %v317_v60 = vadd.f32 %v316_v53, %v315_v49  ;;  %v332_v63 = vadd.f32 %v331_v57, %v330_v50  ;;  %v253_v48 = vld [vmem:[%s2252_s19 + $0x2a8] sm:$0xff]  ;;  %v236_v49 = vld [vmem:[%s2252_s19 + $0x220] sm:$0xff]  ;;  %v207_v50 = vld [vmem:[%s2252_s19 + $0x138] sm:$0xff] }
  0x3d   : > { %1730 = vmatpush3.bf16.msra.mxu0 %v1729_v51  ;;  %v372_v51 = vadd.f32 %v191_v46, %v175_v45  ;;  %v2466_v52 = vld [vmem:[%s3165_s1 + $0x330] sm:$0xff]  ;;  %v2471_v53 = vld [vmem:[%s3165_s1 + $0x338] sm:$0xff]  ;;  %v268_v57 = vld [vmem:[%s2252_s19 + $0x320] sm:$0x1]  ;;  %v335_v58 = vadd.f32 %v334_v44, %v220_v38 }
  0x3e   : > { %v318_v4 = vrot.slane %v317_v60, 1  ;;  %1732 = vmatprep.subr.bf16.mxu0 %v1731_v54  ;;  %880 = vmatprep.mubr.f32.mxu1 %v332_v63  ;;  %v1743_v54 = vpack.c.bf16 %v578_v36, %v577_v29  ;;  %v580_v62 = vld [vmem:[%s3165_s1 + $0x2d8] sm:$0xff]  ;;  %v351_v63 = vsel %vm285_vm0, %v269_v42, 0.0  ;;  %v174_v6 = vld [vmem:[%s2252_s19 + $0x30] sm:$0xff]  ;;  %v610_v10 = vld [vmem:[%s3165_s1 + $0x3c8] sm:$0xff]  ;;  %v338_v12 = vsel %vm285_vm0, %v268_v57, 0.0 }
  0x3f   : > { %v239_v1 = vld [vmem:[%s2252_s19 + $0x238] sm:$0xff]  ;;  %v373_v2 = vadd.f32 %v372_v51, %v207_v50  ;;  %v336_v5 = vadd.f32 %v335_v58, %v236_v49  ;;  %v206_v8 = vld [vmem:[%s2252_s19 + $0x130] sm:$0xff]  ;;  %v1773_v22 = vpack.c.bf16 %v2471_v53, %v2466_v52  ;;  %v581_v23 = vld [vmem:[%s3165_s1 + $0x2e0] sm:$0xff] }
  0x40   : > { %v319_v15 = vadd.f32 %v318_v4, %v317_v60  ;;  %v1769_v60 = vpack.c.bf16 %v2421_v26, %v2416_v25  ;;  %v350_v4 = vadd.f32 %v349_v56, %v253_v48  ;;  %v271_v13 = vld [vmem:[%s2252_s19 + $0x338] sm:$0x1]  ;;  %v582_v24 = vld [vmem:[%s3165_s1 + $0x2e8] sm:$0xff]  ;;  %v593_v28 = vld [vmem:[%s3165_s1 + $0x340] sm:$0xff] }
  0x41   : > { %1734 = vmatpush3.bf16.msra.mxu0 %v1733_v0  ;;  %v252_v0 = vld [vmem:[%s2252_s19 + $0x2a0] sm:$0xff]  ;;  %v374_v14 = vadd.f32 %v373_v2, %v223_v59  ;;  %v564_v17 = vld [vmem:[%s3165_s1 + $0x258] sm:$0xff]  ;;  %v594_v29 = vld [vmem:[%s3165_s1 + $0x348] sm:$0xff]  ;;  %v377_v32 = vsel %vm285_vm0, %v271_v13, 0.0  ;;  %v1751_v40 = vpack.c.bf16 %v582_v24, %v581_v23 }
  0x42   : > { %881 = vmatmul.mubr.f32.vlgmr.msra.gmra.mrb[0].mxu1 %v319_v15  ;;  %1736 = vmatprep.subr.bf16.mxu0 %v1735_v7  ;;  %v190_v7 = vld [vmem:[%s2252_s19 + $0xb0] sm:$0xff]  ;;  %v352_v18 = vadd.f32 %v351_v63, %v350_v4  ;;  %v337_v19 = vadd.f32 %v336_v5, %v252_v0  ;;  %v255_v20 = vld [vmem:[%s2252_s19 + $0x2b8] sm:$0xff]  ;;  %v565_v41 = vld [vmem:[%s3165_s1 + $0x260] sm:$0xff]  ;;  %v1777_v46 = vpack.c.bf16 %v594_v29, %v593_v28 }
  0x43   : > { %1762 = vmatpush3.bf16.msra.mxu1 %v1761_v11  ;;  %v563_v11 = vld [vmem:[%s3165_s1 + $0x250] sm:$0xff]  ;;  %v359_v15 = vadd.f32 %v190_v7, %v174_v6  ;;  %v375_v25 = vadd.f32 %v374_v14, %v239_v1  ;;  %v612_v36 = vld [vmem:[%s3165_s1 + $0x3d8] sm:$0xff]  ;;  %v566_v42 = vld [vmem:[%s3165_s1 + $0x268] sm:$0xff] }
  0x44   : > { %1764 = vmatprep.subr.bf16.mxu1 %v1763_v16  ;;  %v1747_v16 = vpack.c.bf16 %v580_v62, %v579_v55  ;;  %v353_v30 = vrot.slane %v352_v18, 4  ;;  %v339_v31 = vadd.f32 %v338_v12, %v337_v19  ;;  %v1749_v34 = vpack.c.bf16 %v564_v17, %v563_v11  ;;  %v611_v35 = vld [vmem:[%s3165_s1 + $0x3d0] sm:$0xff]  ;;  %v584_v48 = vld [vmem:[%s3165_s1 + $0x2f8] sm:$0xff]  ;;  %v613_v58 = vld [vmem:[%s3165_s1 + $0x3e0] sm:$0xff] }
  0x45   : > { %1738 = vmatpush3.bf16.msra.mxu0 %v1737_v21  ;;  %v222_v21 = vld [vmem:[%s2252_s19 + $0x1b0] sm:$0xff]  ;;  %v360_v26 = vadd.f32 %v359_v15, %v206_v8  ;;  %v376_v37 = vadd.f32 %v375_v25, %v255_v20  ;;  %v1779_v51 = vpack.c.bf16 %v612_v36, %v611_v35  ;;  %v596_v53 = vld [vmem:[%s3165_s1 + $0x358] sm:$0xff]  ;;  %v1753_v57 = vpack.c.bf16 %v566_v42, %v565_v41  ;;  %v614_v59 = vld [vmem:[%s3165_s1 + $0x3e8] sm:$0xff] }
  0x46   : > { %1740 = vmatprep.subr.bf16.mxu0 %v1739_v27  ;;  %v1775_v27 = vpack.c.bf16 %v610_v10, %v609_v61  ;;  %v270_v38 = vld [vmem:[%s2252_s19 + $0x330] sm:$0x1]  ;;  %v354_v43 = vadd.f32 %v353_v30, %v352_v18  ;;  %v340_v44 = vrot.slane %v339_v31, 4  ;;  %v568_v0 = vld [vmem:[%s3165_s1 + $0x278] sm:$0xff]  ;;  %v633_v4 = vld [vmem:[%s3165_s1 + $0x480] sm:$0xff]  ;;  %v1783_v8 = vpack.c.bf16 %v614_v59, %v613_v58 }
  0x47   : > { %1766 = vmatpush3.bf16.msra.mxu1 %v1765_v33  ;;  %v238_v33 = vld [vmem:[%s2252_s19 + $0x230] sm:$0xff]  ;;  %v378_v49 = vadd.f32 %v377_v32, %v376_v37  ;;  %v364_v56 = vsel %vm285_vm0, %v270_v38, 0.0  ;;  %v634_v5 = vld [vmem:[%s3165_s1 + $0x488] sm:$0xff]  ;;  %v616_v15 = vld [vmem:[%s3165_s1 + $0x3f8] sm:$0xff] }
  0x48   : > { %1768 = vmatprep.subr.bf16.mxu1 %v1767_v39  ;;  %v361_v39 = vadd.f32 %v360_v26, %v222_v21  ;;  %v254_v45 = vld [vmem:[%s2252_s19 + $0x2b0] sm:$0xff]  ;;  %v341_v55 = vadd.f32 %v340_v44, %v339_v31  ;;  %v598_v10 = vld [vmem:[%s3165_s1 + $0x368] sm:$0xff]  ;;  %v1791_v20 = vpack.c.bf16 %v634_v5, %v633_v4  ;;  %v617_v21 = vld [vmem:[%s3165_s1 + $0x400] sm:$0xff] }
  0x49   : > { %1742 = vmatpush3.bf16.msra.mxu0 %v1741_v47  ;;  %v583_v47 = vld [vmem:[%s3165_s1 + $0x2f0] sm:$0xff]  ;;  %v600_v30 = vld [vmem:[%s3165_s1 + $0x378] sm:$0xff]  ;;  %v666_v35 = vld [vmem:[%s3165_s1 + $0x588] sm:$0xff] }
  0x4a   : > { %1744 = vmatprep.subr.bf16.mxu0 %v1743_v54  ;;  %v362_v50 = vadd.f32 %v361_v39, %v238_v33  ;;  %v595_v52 = vld [vmem:[%s3165_s1 + $0x350] sm:$0xff]  ;;  %v355_v54 = vrot.slane %v354_v43, 2  ;;  %v1755_v62 = vpack.c.bf16 %v584_v48, %v583_v47  ;;  %v342_v2 = vrot.slane %v341_v55, 2  ;;  %v620_v39 = vld [vmem:[%s3165_s1 + $0x418] sm:$0xff]  ;;  %v638_v44 = vld [vmem:[%s3165_s1 + $0x4a8] sm:$0xff] }
  0x4b   : > { %1770 = vmatpush3.bf16.msra.mxu1 %v1769_v60  ;;  %v379_v60 = vrot.slane %v378_v49, 4  ;;  %v567_v63 = vld [vmem:[%s3165_s1 + $0x270] sm:$0xff]  ;;  %v650_v47 = vld [vmem:[%s3165_s1 + $0x508] sm:$0xff] }
  0x4c   : > { %1772 = vmatprep.subr.bf16.mxu1 %v1771_v3  ;;  %v363_v61 = vadd.f32 %v362_v50, %v254_v45  ;;  %v356_v1 = vadd.f32 %v355_v54, %v354_v43  ;;  %v1781_v3 = vpack.c.bf16 %v596_v53, %v595_v52  ;;  %v343_v12 = vadd.f32 %v342_v2, %v341_v55  ;;  %v615_v14 = vld [vmem:[%s3165_s1 + $0x3f0] sm:$0xff]  ;;  %v637_v43 = vld [vmem:[%s3165_s1 + $0x4a0] sm:$0xff]  ;;  %v177_v53 = vld [vmem:[%s2252_s19 + $0x48] sm:$0xff] }
  0x4d   : > { %1746 = vmatpush3.bf16.msra.mxu0 %v1745_v9  ;;  %v380_v6 = vadd.f32 %v379_v60, %v378_v49  ;;  %v597_v9 = vld [vmem:[%s3165_s1 + $0x360] sm:$0xff]  ;;  %v1757_v13 = vpack.c.bf16 %v568_v0, %v567_v63  ;;  %v635_v26 = vld [vmem:[%s3165_s1 + $0x490] sm:$0xff]  ;;  %v1787_v28 = vpack.c.bf16 %v616_v15, %v615_v14  ;;  %v2642_v55 = vld [vmem:[%s3165_s1 + $0x518] sm:$0xff] }
  0x4e   : > { %1748 = vmatprep.subr.bf16.mxu0 %v1747_v16  ;;  %v365_v7 = vadd.f32 %v364_v56, %v363_v61  ;;  %v357_v11 = vrot.slane %v356_v1, 1  ;;  %v344_v19 = vrot.slane %v343_v12, 1  ;;  %v1785_v23 = vpack.c.bf16 %v598_v10, %v597_v9  ;;  %v599_v29 = vld [vmem:[%s3165_s1 + $0x370] sm:$0xff]  ;;  %v621_v52 = vld [vmem:[%s3165_s1 + $0x420] sm:$0xff]  ;;  %v193_v58 = vld [vmem:[%s2252_s19 + $0xc8] sm:$0xff] }
  0x4f   : > { %1774 = vmatpush3.bf16.msra.mxu1 %v1773_v22  ;;  %v381_v16 = vrot.slane %v380_v6, 2  ;;  %v618_v22 = vld [vmem:[%s3165_s1 + $0x408] sm:$0xff]  ;;  %v619_v38 = vld [vmem:[%s3165_s1 + $0x410] sm:$0xff]  ;;  %v1799_v56 = vpack.c.bf16 %v638_v44, %v637_v43  ;;  %v624_v10 = vld [vmem:[%s3165_s1 + $0x438] sm:$0xff] }
  0x50   : > { %1776 = vmatprep.subr.bf16.mxu1 %v1775_v27  ;;  %v366_v17 = vrot.slane %v365_v7, 4  ;;  %v358_v18 = vadd.f32 %v357_v11, %v356_v1  ;;  %v636_v27 = vld [vmem:[%s3165_s1 + $0x498] sm:$0xff]  ;;  %v345_v31 = vadd.f32 %v344_v19, %v343_v12  ;;  %v1793_v33 = vpack.c.bf16 %v618_v22, %v617_v21  ;;  %v667_v48 = vld [vmem:[%s3165_s1 + $0x590] sm:$0xff]  ;;  %v209_v59 = vld [vmem:[%s2252_s19 + $0x148] sm:$0xff] }
  0x51   : > { %1750 = vmatpush3.bf16.msra.mxu0 %v1749_v34  ;;  %v382_v24 = vadd.f32 %v381_v16, %v380_v6  ;;  %v665_v34 = vld [vmem:[%s3165_s1 + $0x580] sm:$0xff]  ;;  %v1795_v37 = vpack.c.bf16 %v636_v27, %v635_v26  ;;  %v1797_v50 = vpack.c.bf16 %v620_v39, %v619_v38  ;;  %v2637_v54 = vld [vmem:[%s3165_s1 + $0x510] sm:$0xff]  ;;  %v2657_v63 = vld [vmem:[%s3165_s1 + $0x5a8] sm:$0xff] }
  0x52   : > { %1752 = vmatprep.subr.bf16.mxu0 %v1751_v40  ;;  %v367_v25 = vadd.f32 %v366_v17, %v365_v7  ;;  %950 = vmatprep.mubr.f32.mxu0 %v358_v18  ;;  %v1789_v40 = vpack.c.bf16 %v600_v30, %v599_v29  ;;  %v1823_v45 = vpack.c.bf16 %v666_v35, %v665_v34  ;;  %v639_v0 = vld [vmem:[%s3165_s1 + $0x4b0] sm:$0xff]  ;;  %v640_v1 = vld [vmem:[%s3165_s1 + $0x4b8] sm:$0xff]  ;;  %v225_v2 = vld [vmem:[%s2252_s19 + $0x1c8] sm:$0xff] }
  0x53   : > { %1778 = vmatpush3.bf16.msra.mxu1 %v1777_v46  ;;  %v383_v32 = vrot.slane %v382_v24, 1  ;;  %v649_v46 = vld [vmem:[%s3165_s1 + $0x500] sm:$0xff]  ;;  %v2669_v5 = vld [vmem:[%s3165_s1 + $0x430] sm:$0xff]  ;;  %v2685_v12 = vld [vmem:[%s3165_s1 + $0x4c8] sm:$0xff]  ;;  %v1803_v17 = vpack.c.bf16 %v640_v1, %v639_v0  ;;  %v1829_v21 = vpack.c.bf16 %v2642_v55, %v2637_v54 }
  0x54   : > { %1780 = vmatprep.subr.bf16.mxu1 %v1779_v51  ;;  %v368_v36 = vrot.slane %v367_v25, 2  ;;  %v668_v51 = vld [vmem:[%s3165_s1 + $0x598] sm:$0xff]  ;;  %v1825_v61 = vpack.c.bf16 %v650_v47, %v649_v46  ;;  %v176_v6 = vld [vmem:[%s2252_s19 + $0x40] sm:$0xff]  ;;  %v2695_v16 = vld [vmem:[%s3165_s1 + $0x528] sm:$0xff]  ;;  %v1805_v35 = vpack.c.bf16 %v624_v10, %v2669_v5 }
  0x55   : > { %1754 = vmatpush3.bf16.msra.mxu0 %v1753_v57  ;;  %v384_v41 = vadd.f32 %v383_v32, %v382_v24  ;;  %v622_v57 = vld [vmem:[%s3165_s1 + $0x428] sm:$0xff]  ;;  %v1827_v4 = vpack.c.bf16 %v668_v51, %v667_v48  ;;  %v192_v7 = vld [vmem:[%s2252_s19 + $0xc0] sm:$0xff]  ;;  %v2705_v22 = vld [vmem:[%s3165_s1 + $0x5b0] sm:$0xff] }
  0x56   : > { %1756 = vmatprep.subr.bf16.mxu0 %v1755_v62  ;;  %v369_v42 = vadd.f32 %v368_v36, %v367_v25  ;;  %v2652_v62 = vld [vmem:[%s3165_s1 + $0x5a0] sm:$0xff]  ;;  %v1801_v9 = vpack.c.bf16 %v622_v57, %v621_v52  ;;  %v385_v14 = vadd.f32 %v192_v7, %v176_v6  ;;  %v241_v18 = vld [vmem:[%s2252_s19 + $0x248] sm:$0xff]  ;;  %v179_v26 = vld [vmem:[%s2252_s19 + $0x58] sm:$0xff] }
  0x57   : > { %1782 = vmatpush3.bf16.msra.mxu1 %v1781_v3  ;;  %1020 = vmatprep.mubr.f32.mxu1 %v384_v41  ;;  %v398_v3 = vadd.f32 %v193_v58, %v177_v53  ;;  %v2680_v11 = vld [vmem:[%s3165_s1 + $0x4c0] sm:$0xff]  ;;  %v273_v19 = vld [vmem:[%s2252_s19 + $0x348] sm:$0x1]  ;;  %v195_v27 = vld [vmem:[%s2252_s19 + $0xd8] sm:$0xff]  ;;  %v1831_v29 = vpack.c.bf16 %v2657_v63, %v2652_v62 }
  0x58   : > { %1784 = vmatprep.subr.bf16.mxu1 %v1783_v8  ;;  %v370_v49 = vrot.slane %v369_v42, 1  ;;  %v208_v8 = vld [vmem:[%s2252_s19 + $0x140] sm:$0xff]  ;;  %v257_v32 = vld [vmem:[%s2252_s19 + $0x2c8] sm:$0xff]  ;;  %v424_v34 = vadd.f32 %v195_v27, %v179_v26  ;;  %v2731_v36 = vld [vmem:[%s3165_s1 + $0x4d0] sm:$0xff]  ;;  %v403_v44 = vsel %vm285_vm0, %v273_v19, 0.0 }
  0x59   : > { %1758 = vmatpush3.bf16.msra.mxu0 %v1757_v13  ;;  %v399_v13 = vadd.f32 %v398_v3, %v209_v59  ;;  %v2690_v15 = vld [vmem:[%s3165_s1 + $0x520] sm:$0xff]  ;;  %v386_v25 = vadd.f32 %v385_v14, %v208_v8  ;;  %v2738_v41 = vld [vmem:[%s3165_s1 + $0x530] sm:$0xff]  ;;  %v644_v43 = vld [vmem:[%s3165_s1 + $0x4d8] sm:$0xff] }
  0x5a   : > { %1792 = vmatprep.subr.bf16.mxu0 %v1791_v20  ;;  %v371_v60 = vadd.f32 %v370_v49, %v369_v42  ;;  %v224_v20 = vld [vmem:[%s2252_s19 + $0x1c0] sm:$0xff]  ;;  %v1807_v42 = vpack.c.bf16 %v2685_v12, %v2680_v11  ;;  %v178_v47 = vld [vmem:[%s2252_s19 + $0x50] sm:$0xff]  ;;  %v1833_v48 = vpack.c.bf16 %v2695_v16, %v2690_v15  ;;  %v243_v51 = vld [vmem:[%s2252_s19 + $0x258] sm:$0xff]  ;;  %v1811_v3 = vpack.c.bf16 %v644_v43, %v2731_v36 }
  0x5b   : > { %1786 = vmatpush3.bf16.msra.mxu1 %v1785_v23  ;;  %v2710_v23 = vld [vmem:[%s3165_s1 + $0x5b8] sm:$0xff]  ;;  %v400_v24 = vadd.f32 %v399_v13, %v225_v2  ;;  %v2720_v30 = vld [vmem:[%s3165_s1 + $0x440] sm:$0xff]  ;;  %v387_v39 = vadd.f32 %v386_v25, %v224_v20  ;;  %v194_v52 = vld [vmem:[%s2252_s19 + $0xd0] sm:$0xff] }
  0x5c   : > { %1788 = vmatprep.subr.bf16.mxu1 %v1787_v28  ;;  %951 = vmatmul.mubr.f32.vlgmr.msra.gmra.mrb[2].mxu0 %v345_v31  ;;  %v211_v28 = vld [vmem:[%s2252_s19 + $0x158] sm:$0xff]  ;;  %v626_v31 = vld [vmem:[%s3165_s1 + $0x448] sm:$0xff]  ;;  %v272_v38 = vld [vmem:[%s2252_s19 + $0x340] sm:$0x1]  ;;  %v1835_v54 = vpack.c.bf16 %v2710_v23, %v2705_v22 }
  0x5d   : > { %1794 = vmatpush3.bf16.msra.mxu0 %v1793_v33  ;;  %v240_v33 = vld [vmem:[%s2252_s19 + $0x240] sm:$0xff]  ;;  %v425_v46 = vadd.f32 %v424_v34, %v211_v28  ;;  %v210_v53 = vld [vmem:[%s2252_s19 + $0x150] sm:$0xff]  ;;  %v656_v55 = vld [vmem:[%s3165_s1 + $0x538] sm:$0xff]  ;;  %v390_v57 = vsel %vm285_vm0, %v272_v38, 0.0 }
  0x5e   : > { %1796 = vmatprep.subr.bf16.mxu0 %v1795_v37  ;;  %v401_v37 = vadd.f32 %v400_v24, %v241_v18  ;;  %v275_v58 = vld [vmem:[%s2252_s19 + $0x358] sm:$0x1]  ;;  %v674_v62 = vld [vmem:[%s3165_s1 + $0x5c8] sm:$0xff]  ;;  %v226_v2 = vld [vmem:[%s2252_s19 + $0x1d0] sm:$0xff]  ;;  %v1837_v8 = vpack.c.bf16 %v656_v55, %v2738_v41 }
  0x5f   : > { %1790 = vmatpush3.bf16.msra.mxu1 %v1789_v40  ;;  %v227_v40 = vld [vmem:[%s2252_s19 + $0x1d8] sm:$0xff]  ;;  %v646_v10 = vld [vmem:[%s3165_s1 + $0x4e8] sm:$0xff]  ;;  %v429_v13 = vsel %vm285_vm0, %v275_v58, 0.0  ;;  %v242_v14 = vld [vmem:[%s2252_s19 + $0x250] sm:$0xff] }
  0x60   : > { %1824 = vmatprep.subr.bf16.mxu1 %v1823_v45  ;;  %v256_v45 = vld [vmem:[%s2252_s19 + $0x2c0] sm:$0xff]  ;;  %v402_v49 = vadd.f32 %v401_v37, %v257_v32  ;;  %v426_v59 = vadd.f32 %v425_v46, %v227_v40  ;;  %v259_v1 = vld [vmem:[%s2252_s19 + $0x2d8] sm:$0xff]  ;;  %v274_v19 = vld [vmem:[%s2252_s19 + $0x350] sm:$0x1] }
  0x61   : > { %1798 = vmatpush3.bf16.msra.mxu0 %v1797_v50  ;;  %v388_v50 = vadd.f32 %v387_v39, %v240_v33  ;;  %v628_v5 = vld [vmem:[%s3165_s1 + $0x458] sm:$0xff]  ;;  %v657_v16 = vld [vmem:[%s3165_s1 + $0x540] sm:$0xff]  ;;  %v675_v22 = vld [vmem:[%s3165_s1 + $0x5d0] sm:$0xff]  ;;  %v416_v37 = vsel %vm285_vm0, %v274_v19, 0.0 }
  0x62   : > { %1021 = vmatmul.mubr.f32.vlgmr.msra.gmra.mrb[2].mxu1 %v371_v60  ;;  %1800 = vmatprep.subr.bf16.mxu0 %v1799_v56  ;;  %v673_v56 = vld [vmem:[%s3165_s1 + $0x5c0] sm:$0xff]  ;;  %v411_v60 = vadd.f32 %v194_v52, %v178_v47  ;;  %v404_v63 = vadd.f32 %v403_v44, %v402_v49  ;;  %v427_v6 = vadd.f32 %v426_v59, %v243_v51  ;;  %v676_v23 = vld [vmem:[%s3165_s1 + $0x5d8] sm:$0xff]  ;;  %v258_v26 = vld [vmem:[%s2252_s19 + $0x2d0] sm:$0xff] }
  0x63   : > { %1826 = vmatpush3.bf16.msra.mxu1 %v1825_v61  ;;  %v1809_v61 = vpack.c.bf16 %v626_v31, %v2720_v30  ;;  %v389_v0 = vadd.f32 %v388_v50, %v256_v45  ;;  %v1839_v15 = vpack.c.bf16 %v674_v62, %v673_v56  ;;  %v629_v28 = vld [vmem:[%s3165_s1 + $0x460] sm:$0xff]  ;;  %v647_v33 = vld [vmem:[%s3165_s1 + $0x4f0] sm:$0xff]  ;;  %v648_v34 = vld [vmem:[%s3165_s1 + $0x4f8] sm:$0xff]  ;;  %v1843_v38 = vpack.c.bf16 %v676_v23, %v675_v22 }
  0x64   : > { %1828 = vmatprep.subr.bf16.mxu1 %v1827_v4  ;;  %v627_v4 = vld [vmem:[%s3165_s1 + $0x450] sm:$0xff]  ;;  %v412_v7 = vadd.f32 %v411_v60, %v210_v53  ;;  %v405_v11 = vrot.slane %v404_v63, 4  ;;  %v428_v18 = vadd.f32 %v427_v6, %v259_v1  ;;  %v660_v40 = vld [vmem:[%s3165_s1 + $0x558] sm:$0xff]  ;;  %v677_v44 = vld [vmem:[%s3165_s1 + $0x5e0] sm:$0xff] }
  0x65   : > { %1802 = vmatpush3.bf16.msra.mxu0 %v1801_v9  ;;  %v645_v9 = vld [vmem:[%s3165_s1 + $0x4e0] sm:$0xff]  ;;  %v391_v12 = vadd.f32 %v390_v57, %v389_v0  ;;  %v659_v39 = vld [vmem:[%s3165_s1 + $0x550] sm:$0xff]  ;;  %v678_v45 = vld [vmem:[%s3165_s1 + $0x5e8] sm:$0xff] }
  0x66   : > { %1804 = vmatprep.subr.bf16.mxu0 %v1803_v17  ;;  %v658_v17 = vld [vmem:[%s3165_s1 + $0x548] sm:$0xff]  ;;  %v413_v20 = vadd.f32 %v412_v7, %v226_v2  ;;  %v406_v24 = vadd.f32 %v405_v11, %v404_v63  ;;  %v1815_v27 = vpack.c.bf16 %v646_v10, %v645_v9  ;;  %v430_v30 = vadd.f32 %v429_v13, %v428_v18  ;;  %v631_v49 = vld [vmem:[%s3165_s1 + $0x470] sm:$0xff]  ;;  %v632_v50 = vld [vmem:[%s3165_s1 + $0x478] sm:$0xff] }
  0x67   : > { %1830 = vmatpush3.bf16.msra.mxu1 %v1829_v21  ;;  %v1813_v21 = vpack.c.bf16 %v628_v5, %v627_v4  ;;  %v392_v25 = vrot.slane %v391_v12, 4  ;;  %v1841_v32 = vpack.c.bf16 %v658_v17, %v657_v16  ;;  %v1845_v53 = vpack.c.bf16 %v660_v40, %v659_v39  ;;  %v697_v56 = vld [vmem:[%s3165_s1 + $0x680] sm:$0xff]  ;;  %v698_v57 = vld [vmem:[%s3165_s1 + $0x688] sm:$0xff]  ;;  %v679_v0 = vld [vmem:[%s3165_s1 + $0x5f0] sm:$0xff] }
  0x68   : > { %1832 = vmatprep.subr.bf16.mxu1 %v1831_v29  ;;  %v630_v29 = vld [vmem:[%s3165_s1 + $0x468] sm:$0xff]  ;;  %v414_v31 = vadd.f32 %v413_v20, %v242_v14  ;;  %v431_v41 = vrot.slane %v430_v30, 4  ;;  %v1847_v58 = vpack.c.bf16 %v678_v45, %v677_v44  ;;  %v661_v59 = vld [vmem:[%s3165_s1 + $0x560] sm:$0xff]  ;;  %v1821_v63 = vpack.c.bf16 %v632_v50, %v631_v49  ;;  %v680_v1 = vld [vmem:[%s3165_s1 + $0x5f8] sm:$0xff] }
  0x69   : > { %1806 = vmatpush3.bf16.msra.mxu0 %v1805_v35  ;;  %v407_v35 = vrot.slane %v406_v24, 2  ;;  %v393_v36 = vadd.f32 %v392_v25, %v391_v12  ;;  %v1817_v43 = vpack.c.bf16 %v630_v29, %v629_v28  ;;  %v662_v60 = vld [vmem:[%s3165_s1 + $0x568] sm:$0xff]  ;;  %v1855_v4 = vpack.c.bf16 %v698_v57, %v697_v56  ;;  %v681_v6 = vld [vmem:[%s3165_s1 + $0x600] sm:$0xff]  ;;  %v699_v10 = vld [vmem:[%s3165_s1 + $0x690] sm:$0xff] }
  0x6a   : > { %1808 = vmatprep.subr.bf16.mxu0 %v1807_v42  ;;  %v415_v42 = vadd.f32 %v414_v31, %v258_v26  ;;  %v432_v51 = vadd.f32 %v431_v41, %v430_v30  ;;  %v682_v7 = vld [vmem:[%s3165_s1 + $0x608] sm:$0xff]  ;;  %v1849_v9 = vpack.c.bf16 %v662_v60, %v661_v59  ;;  %v700_v11 = vld [vmem:[%s3165_s1 + $0x698] sm:$0xff]  ;;  %v1851_v12 = vpack.c.bf16 %v680_v1, %v679_v0  ;;  %v663_v13 = vld [vmem:[%s3165_s1 + $0x570] sm:$0xff] }
  0x6b   : > { %1834 = vmatpush3.bf16.msra.mxu1 %v1833_v48  ;;  %v408_v46 = vadd.f32 %v407_v35, %v406_v24  ;;  %v394_v47 = vrot.slane %v393_v36, 2  ;;  %v1819_v48 = vpack.c.bf16 %v648_v34, %v647_v33  ;;  %v664_v14 = vld [vmem:[%s3165_s1 + $0x578] sm:$0xff]  ;;  %v1857_v18 = vpack.c.bf16 %v682_v7, %v681_v6  ;;  %v729_v19 = vld [vmem:[%s3165_s1 + $0x780] sm:$0xff]  ;;  %v730_v20 = vld [vmem:[%s3165_s1 + $0x788] sm:$0xff] }
  0x6c   : > { %1836 = vmatprep.subr.bf16.mxu1 %v1835_v54  ;;  %v417_v52 = vadd.f32 %v416_v37, %v415_v42  ;;  %v2875_v23 = vld [vmem:[%s3165_s1 + $0x700] sm:$0xff]  ;;  %v2880_v24 = vld [vmem:[%s3165_s1 + $0x708] sm:$0xff]  ;;  %v1859_v25 = vpack.c.bf16 %v700_v11, %v699_v10  ;;  %v683_v26 = vld [vmem:[%s3165_s1 + $0x610] sm:$0xff]  ;;  %v1853_v28 = vpack.c.bf16 %v664_v14, %v663_v13 }
  0x6d   : > { %1810 = vmatpush3.bf16.msra.mxu0 %v1809_v61  ;;  %v409_v54 = vrot.slane %v408_v46, 1  ;;  %v395_v55 = vadd.f32 %v394_v47, %v393_v36  ;;  %v433_v61 = vrot.slane %v432_v51, 2  ;;  %v2891_v29 = vld [vmem:[%s3165_s1 + $0x790] sm:$0xff]  ;;  %v701_v30 = vld [vmem:[%s3165_s1 + $0x6a0] sm:$0xff]  ;;  %v702_v31 = vld [vmem:[%s3165_s1 + $0x6a8] sm:$0xff] }
  0x6e   : > { %1812 = vmatprep.subr.bf16.mxu0 %v1811_v3  ;;  %v418_v62 = vrot.slane %v417_v52, 4  ;;  %v732_v34 = vld [vmem:[%s3165_s1 + $0x798] sm:$0xff]  ;;  %v181_v35 = vld [vmem:[%s2252_s19 + $0x68] sm:$0xff]  ;;  %v1863_v45 = vpack.c.bf16 %v702_v31, %v701_v30  ;;  %v180_v50 = vld [vmem:[%s2252_s19 + $0x60] sm:$0xff] }
  0x6f   : > { %1838 = vmatpush3.bf16.msra.mxu1 %v1837_v8  ;;  %v410_v2 = vadd.f32 %v409_v54, %v408_v46  ;;  %v396_v3 = vrot.slane %v395_v55, 1  ;;  %v434_v5 = vadd.f32 %v433_v61, %v432_v51  ;;  %v197_v36 = vld [vmem:[%s2252_s19 + $0xe8] sm:$0xff]  ;;  %v2919_v44 = vld [vmem:[%s3165_s1 + $0x718] sm:$0xff]  ;;  %v2924_v46 = vld [vmem:[%s3165_s1 + $0x7a0] sm:$0xff]  ;;  %v1889_v51 = vpack.c.bf16 %v2880_v24, %v2875_v23 }
  0x70   : > { %1840 = vmatprep.subr.bf16.mxu1 %v1839_v15  ;;  %v419_v8 = vadd.f32 %v418_v62, %v417_v52  ;;  %v686_v39 = vld [vmem:[%s3165_s1 + $0x628] sm:$0xff]  ;;  %v450_v41 = vadd.f32 %v197_v36, %v181_v35  ;;  %v704_v52 = vld [vmem:[%s3165_s1 + $0x6b8] sm:$0xff]  ;;  %v196_v54 = vld [vmem:[%s2252_s19 + $0xe0] sm:$0xff]  ;;  %v1891_v56 = vpack.c.bf16 %v732_v34, %v2891_v29 }
  0x71   : > { %1814 = vmatpush3.bf16.msra.mxu0 %v1813_v21  ;;  %1090 = vmatprep.mubr.f32.mxu0 %v410_v2  ;;  %v397_v15 = vadd.f32 %v396_v3, %v395_v55  ;;  %v435_v16 = vrot.slane %v434_v5, 1  ;;  %v213_v40 = vld [vmem:[%s2252_s19 + $0x168] sm:$0xff]  ;;  %v212_v55 = vld [vmem:[%s2252_s19 + $0x160] sm:$0xff]  ;;  %v2947_v57 = vld [vmem:[%s3165_s1 + $0x630] sm:$0xff]  ;;  %v437_v62 = vadd.f32 %v196_v54, %v180_v50 }
  0x72   : > { %1816 = vmatprep.subr.bf16.mxu0 %v1815_v27  ;;  %v420_v17 = vrot.slane %v419_v8, 2  ;;  %v684_v27 = vld [vmem:[%s3165_s1 + $0x618] sm:$0xff]  ;;  %v2929_v47 = vld [vmem:[%s3165_s1 + $0x7a8] sm:$0xff]  ;;  %v228_v61 = vld [vmem:[%s2252_s19 + $0x1e0] sm:$0xff] }
  0x73   : > { %1842 = vmatpush3.bf16.msra.mxu1 %v1841_v32  ;;  %v436_v21 = vadd.f32 %v435_v16, %v434_v5  ;;  %v1887_v32 = vpack.c.bf16 %v730_v20, %v729_v19  ;;  %v1861_v37 = vpack.c.bf16 %v684_v27, %v683_v26  ;;  %v229_v49 = vld [vmem:[%s2252_s19 + $0x1e8] sm:$0xff]  ;;  %v2960_v0 = vld [vmem:[%s3165_s1 + $0x6c0] sm:$0xff]  ;;  %v183_v2 = vld [vmem:[%s2252_s19 + $0x78] sm:$0xff]  ;;  %v438_v11 = vadd.f32 %v437_v62, %v212_v55 }
  0x74   : > { %1844 = vmatprep.subr.bf16.mxu1 %v1843_v38  ;;  %v421_v22 = vadd.f32 %v420_v17, %v419_v8  ;;  %v685_v38 = vld [vmem:[%s3165_s1 + $0x620] sm:$0xff]  ;;  %v245_v59 = vld [vmem:[%s2252_s19 + $0x268] sm:$0xff]  ;;  %v199_v3 = vld [vmem:[%s2252_s19 + $0xf8] sm:$0xff]  ;;  %v1895_v14 = vpack.c.bf16 %v2929_v47, %v2924_v46 }
  0x75   : > { %1818 = vmatpush3.bf16.msra.mxu0 %v1817_v43  ;;  %1160 = vmatprep.mubr.f32.mxu1 %v436_v21  ;;  %v2914_v43 = vld [vmem:[%s3165_s1 + $0x710] sm:$0xff]  ;;  %v277_v60 = vld [vmem:[%s2252_s19 + $0x368] sm:$0x1]  ;;  %v2968_v5 = vld [vmem:[%s3165_s1 + $0x720] sm:$0xff]  ;;  %v439_v24 = vadd.f32 %v438_v11, %v228_v61 }
  0x76   : > { %1820 = vmatprep.subr.bf16.mxu0 %v1819_v48  ;;  %v422_v33 = vrot.slane %v421_v22, 1  ;;  %v703_v48 = vld [vmem:[%s3165_s1 + $0x6b0] sm:$0xff]  ;;  %v2973_v6 = vld [vmem:[%s3165_s1 + $0x728] sm:$0xff]  ;;  %v244_v10 = vld [vmem:[%s2252_s19 + $0x260] sm:$0xff]  ;;  %v1893_v13 = vpack.c.bf16 %v2919_v44, %v2914_v43 }
  0x77   : > { %1846 = vmatpush3.bf16.msra.mxu1 %v1845_v53  ;;  %v451_v53 = vadd.f32 %v450_v41, %v213_v40  ;;  %v1867_v7 = vpack.c.bf16 %v704_v52, %v703_v48  ;;  %v706_v8 = vld [vmem:[%s3165_s1 + $0x6c8] sm:$0xff]  ;;  %v736_v16 = vld [vmem:[%s3165_s1 + $0x7b8] sm:$0xff]  ;;  %v182_v19 = vld [vmem:[%s2252_s19 + $0x70] sm:$0xff]  ;;  %v440_v36 = vadd.f32 %v439_v24, %v244_v10  ;;  %v1897_v40 = vpack.c.bf16 %v2973_v6, %v2968_v5 }
  0x78   : > { %1848 = vmatprep.subr.bf16.mxu1 %v1847_v58  ;;  %v423_v42 = vadd.f32 %v422_v33, %v421_v22  ;;  %v2952_v58 = vld [vmem:[%s3165_s1 + $0x638] sm:$0xff]  ;;  %v198_v20 = vld [vmem:[%s2252_s19 + $0xf0] sm:$0xff]  ;;  %v2998_v21 = vld [vmem:[%s3165_s1 + $0x640] sm:$0xff]  ;;  %v455_v22 = vsel %vm285_vm0, %v277_v60, 0.0  ;;  %v1871_v33 = vpack.c.bf16 %v706_v8, %v2960_v0 }
  0x79   : > { %1822 = vmatpush3.bf16.msra.mxu0 %v1821_v63  ;;  %v1865_v63 = vpack.c.bf16 %v686_v39, %v685_v38  ;;  %v452_v1 = vadd.f32 %v451_v53, %v229_v49  ;;  %v276_v23 = vld [vmem:[%s2252_s19 + $0x360] sm:$0x1]  ;;  %v214_v26 = vld [vmem:[%s2252_s19 + $0x170] sm:$0xff]  ;;  %v463_v27 = vadd.f32 %v198_v20, %v182_v19  ;;  %v247_v31 = vld [vmem:[%s2252_s19 + $0x278] sm:$0xff] }
  0x7a   : > { %1856 = vmatprep.subr.bf16.mxu0 %v1855_v4  ;;  %v215_v4 = vld [vmem:[%s2252_s19 + $0x178] sm:$0xff]  ;;  %v260_v30 = vld [vmem:[%s2252_s19 + $0x2e0] sm:$0xff]  ;;  %v690_v34 = vld [vmem:[%s3165_s1 + $0x648] sm:$0xff]  ;;  %v442_v43 = vsel %vm285_vm0, %v276_v23, 0.0 }
  0x7b   : > { %1850 = vmatpush3.bf16.msra.mxu1 %v1849_v9  ;;  %v261_v9 = vld [vmem:[%s2252_s19 + $0x2e8] sm:$0xff]  ;;  %v453_v17 = vadd.f32 %v452_v1, %v245_v59  ;;  %v707_v35 = vld [vmem:[%s3165_s1 + $0x6d0] sm:$0xff]  ;;  %v464_v39 = vadd.f32 %v463_v27, %v214_v26  ;;  %v708_v41 = vld [vmem:[%s3165_s1 + $0x6d8] sm:$0xff]  ;;  %v441_v49 = vadd.f32 %v440_v36, %v260_v30  ;;  %v1873_v53 = vpack.c.bf16 %v690_v34, %v2998_v21 }
  0x7c   : > { %1852 = vmatprep.subr.bf16.mxu1 %v1851_v12  ;;  %1091 = vmatmul.mubr.f32.vlgmr.msra.gmra.mrb[4].mxu0 %v397_v15  ;;  %v476_v12 = vadd.f32 %v199_v3, %v183_v2  ;;  %v2987_v15 = vld [vmem:[%s3165_s1 + $0x7b0] sm:$0xff]  ;;  %v263_v44 = vld [vmem:[%s2252_s19 + $0x2f8] sm:$0xff]  ;;  %v737_v54 = vld [vmem:[%s3165_s1 + $0x7c0] sm:$0xff]  ;;  %v1875_v59 = vpack.c.bf16 %v708_v41, %v707_v35 }
  0x7d   : > { %1858 = vmatpush3.bf16.msra.mxu0 %v1857_v18  ;;  %v231_v18 = vld [vmem:[%s2252_s19 + $0x1f8] sm:$0xff]  ;;  %v454_v29 = vadd.f32 %v453_v17, %v261_v9  ;;  %v1899_v46 = vpack.c.bf16 %v736_v16, %v2987_v15  ;;  %v719_v47 = vld [vmem:[%s3165_s1 + $0x730] sm:$0xff]  ;;  %v738_v55 = vld [vmem:[%s3165_s1 + $0x7c8] sm:$0xff]  ;;  %v443_v62 = vadd.f32 %v442_v43, %v441_v49 }
  0x7e   : > { %1860 = vmatprep.subr.bf16.mxu0 %v1859_v25  ;;  %v477_v25 = vadd.f32 %v476_v12, %v215_v4  ;;  %v720_v48 = vld [vmem:[%s3165_s1 + $0x738] sm:$0xff]  ;;  %v691_v60 = vld [vmem:[%s3165_s1 + $0x650] sm:$0xff]  ;;  %v709_v2 = vld [vmem:[%s3165_s1 + $0x6e0] sm:$0xff]  ;;  %v1903_v6 = vpack.c.bf16 %v738_v55, %v737_v54 }
  0x7f   : > { %1854 = vmatpush3.bf16.msra.mxu1 %v1853_v28  ;;  %v1869_v28 = vpack.c.bf16 %v2952_v58, %v2947_v57  ;;  %v262_v58 = vld [vmem:[%s2252_s19 + $0x2f0] sm:$0xff]  ;;  %v692_v61 = vld [vmem:[%s3165_s1 + $0x658] sm:$0xff]  ;;  %v1901_v1 = vpack.c.bf16 %v720_v48, %v719_v47  ;;  %v710_v3 = vld [vmem:[%s3165_s1 + $0x6e8] sm:$0xff]  ;;  %v444_v9 = vrot.slane %v443_v62, 4 }
  0x80   : > { %1888 = vmatprep.subr.bf16.mxu1 %v1887_v32  ;;  %v230_v32 = vld [vmem:[%s2252_s19 + $0x1f0] sm:$0xff]  ;;  %v478_v38 = vadd.f32 %v477_v25, %v231_v18  ;;  %v722_v8 = vld [vmem:[%s3165_s1 + $0x748] sm:$0xff]  ;;  %v1877_v12 = vpack.c.bf16 %v692_v61, %v691_v60  ;;  %v1879_v16 = vpack.c.bf16 %v710_v3, %v709_v2  ;;  %v693_v17 = vld [vmem:[%s3165_s1 + $0x660] sm:$0xff] }
  0x81   : > { %1862 = vmatpush3.bf16.msra.mxu0 %v1861_v37  ;;  %v279_v37 = vld [vmem:[%s2252_s19 + $0x378] sm:$0x1]  ;;  %v465_v52 = vadd.f32 %v464_v39, %v230_v32  ;;  %v694_v18 = vld [vmem:[%s3165_s1 + $0x668] sm:$0xff]  ;;  %v445_v19 = vadd.f32 %v444_v9, %v443_v62  ;;  %v711_v23 = vld [vmem:[%s3165_s1 + $0x6f0] sm:$0xff] }
  0x82   : > { %1161 = vmatmul.mubr.f32.vlgmr.msra.gmra.mrb[4].mxu1 %v423_v42  ;;  %1864 = vmatprep.subr.bf16.mxu0 %v1863_v45  ;;  %v456_v42 = vadd.f32 %v455_v22, %v454_v29  ;;  %v246_v45 = vld [vmem:[%s2252_s19 + $0x270] sm:$0xff]  ;;  %v479_v50 = vadd.f32 %v478_v38, %v247_v31  ;;  %v481_v57 = vsel %vm285_vm0, %v279_v37, 0.0  ;;  %v712_v24 = vld [vmem:[%s3165_s1 + $0x6f8] sm:$0xff]  ;;  %v1881_v32 = vpack.c.bf16 %v694_v18, %v693_v17  ;;  %v742_v34 = vld [vmem:[%s3165_s1 + $0x7e8] sm:$0xff] }
  0x83   : > { %1890 = vmatpush3.bf16.msra.mxu1 %v1889_v51  ;;  %v278_v51 = vld [vmem:[%s2252_s19 + $0x370] sm:$0x1]  ;;  %v466_v0 = vadd.f32 %v465_v52, %v246_v45  ;;  %v446_v29 = vrot.slane %v445_v19, 2  ;;  %v1883_v36 = vpack.c.bf16 %v712_v24, %v711_v23  ;;  %v696_v38 = vld [vmem:[%s3165_s1 + $0x678] sm:$0xff]  ;;  %v725_v45 = vld [vmem:[%s3165_s1 + $0x760] sm:$0xff]  ;;  %s1965_s19 = scalar_lea.vmem %s1964_s6, 32 }
  0x84   : > { %1892 = vmatprep.subr.bf16.mxu1 %v1891_v56  ;;  %v457_v56 = vrot.slane %v456_v42, 4  ;;  %v468_v5 = vsel %vm285_vm0, %v278_v51, 0.0  ;;  %v723_v27 = vld [vmem:[%s3165_s1 + $0x750] sm:$0xff]  ;;  %v744_v52 = vld [vmem:[%s3165_s1 + $0x7f8] sm:$0xff]  ;;  %v745_v3 = vld [vmem:[%s3166_s2] sm:$0x1]  ;;  %p1967_p1 = scmp.lt.s32.totalorder %s1965_s19, %s1959_s5 }
  0x85   : > { %1866 = vmatpush3.bf16.msra.mxu0 %v1865_v63  ;;  %v480_v63 = vadd.f32 %v479_v50, %v263_v44  ;;  %v467_v11 = vadd.f32 %v466_v0, %v262_v58  ;;  %v695_v37 = vld [vmem:[%s3165_s1 + $0x670] sm:$0xff]  ;;  %v447_v39 = vadd.f32 %v446_v29, %v445_v19  ;;  %v728_v58 = vld [vmem:[%s3165_s1 + $0x778] sm:$0xff] }
  0x86   : > { %1868 = vmatprep.subr.bf16.mxu0 %v1867_v7  ;;  %v458_v4 = vadd.f32 %v457_v56, %v456_v42  ;;  %v721_v7 = vld [vmem:[%s3165_s1 + $0x740] sm:$0xff]  ;;  %v1885_v50 = vpack.c.bf16 %v696_v38, %v695_v37  ;;  %v743_v51 = vld [vmem:[%s3165_s1 + $0x7f0] sm:$0xff]  ;;  %p1968_p2 = por %p1967_p1, %p1966_p0 }
  0x87   : > { %1894 = vmatpush3.bf16.msra.mxu1 %v1893_v13  ;;  %v482_v10 = vadd.f32 %v481_v57, %v480_v63  ;;  %v739_v13 = vld [vmem:[%s3165_s1 + $0x7d0] sm:$0xff]  ;;  %v469_v21 = vadd.f32 %v468_v5, %v467_v11  ;;  %v1905_v22 = vpack.c.bf16 %v722_v8, %v721_v7  ;;  %v448_v47 = vrot.slane %v447_v39, 1 }
  0x88   : > { %1896 = vmatprep.subr.bf16.mxu1 %v1895_v14  ;;  %v740_v14 = vld [vmem:[%s3165_s1 + $0x7d8] sm:$0xff]  ;;  %v459_v15 = vrot.slane %v458_v4, 2  ;;  %v1915_v56 = vpack.c.bf16 %v744_v52, %v743_v51  ;;  %v727_v57 = vld [vmem:[%s3165_s1 + $0x770] sm:$0xff]  ;;  %p1969_p3 = pnand %p1968_p2, %p1962_p13 }
  0x89   : > { %1870 = vmatpush3.bf16.msra.mxu0 %v1869_v28  ;;  %v483_v20 = vrot.slane %v482_v10, 4  ;;  %v1907_v26 = vpack.c.bf16 %v740_v14, %v739_v13  ;;  %v724_v28 = vld [vmem:[%s3165_s1 + $0x758] sm:$0xff]  ;;  %v470_v31 = vrot.slane %v469_v21, 4  ;;  %v1917_v62 = vpack.c.bf16 %v728_v58, %v727_v57 }
  0x8a   : > { %1872 = vmatprep.subr.bf16.mxu0 %v1871_v33  ;;  %v460_v25 = vadd.f32 %v459_v15, %v458_v4  ;;  %v741_v33 = vld [vmem:[%s3165_s1 + $0x7e0] sm:$0xff]  ;;  %v1909_v42 = vpack.c.bf16 %v724_v28, %v723_v27 }
  0x8b   : > { %1898 = vmatpush3.bf16.msra.mxu1 %v1897_v40  ;;  %v484_v30 = vadd.f32 %v483_v20, %v482_v10  ;;  %v471_v41 = vadd.f32 %v470_v31, %v469_v21  ;;  %v1911_v44 = vpack.c.bf16 %v742_v34, %v741_v33 }
  0x8c   : > { %1900 = vmatprep.subr.bf16.mxu1 %v1899_v46  ;;  %v461_v35 = vrot.slane %v460_v25, 1  ;;  %v726_v46 = vld [vmem:[%s3165_s1 + $0x768] sm:$0xff] }
  0x8d   : > { %1874 = vmatpush3.bf16.msra.mxu0 %v1873_v53  ;;  %v485_v40 = vrot.slane %v484_v30, 2  ;;  %v472_v49 = vrot.slane %v471_v41, 2  ;;  %v1913_v55 = vpack.c.bf16 %v726_v46, %v725_v45 }
  0x8e   : > { %1876 = vmatprep.subr.bf16.mxu0 %v1875_v59  ;;  %v462_v43 = vadd.f32 %v461_v35, %v460_v25  ;;  %v449_v59 = vadd.f32 %v448_v47, %v447_v39 }
  0x8f   : > { %1902 = vmatpush3.bf16.msra.mxu1 %v1901_v1  ;;  %v486_v48 = vadd.f32 %v485_v40, %v484_v30  ;;  %v473_v54 = vadd.f32 %v472_v49, %v471_v41 }
  0x90   : > { %1904 = vmatprep.subr.bf16.mxu1 %v1903_v6  ;;  %1230 = vmatprep.mubr.f32.mxu0 %v462_v43 }
  0x91   : > { %1878 = vmatpush3.bf16.msra.mxu0 %v1877_v12  ;;  %v487_v53 = vrot.slane %v486_v48, 1  ;;  %v474_v61 = vrot.slane %v473_v54, 1 }
  0x92   : > { %1880 = vmatprep.subr.bf16.mxu0 %v1879_v16 }
  0x93   : > { %1906 = vmatpush3.bf16.msra.mxu1 %v1905_v22  ;;  %v488_v60 = vadd.f32 %v487_v53, %v486_v48  ;;  %v475_v63 = vadd.f32 %v474_v61, %v473_v54 }
  0x94   : > { %1908 = vmatprep.subr.bf16.mxu1 %v1907_v26 }
  0x95   : > { %1882 = vmatpush3.bf16.msra.mxu0 %v1881_v32  ;;  %1300 = vmatprep.mubr.f32.mxu1 %v488_v60 }
  0x96   : > { %1884 = vmatprep.subr.bf16.mxu0 %v1883_v36 }
  0x97   : > { %1910 = vmatpush3.bf16.msra.mxu1 %v1909_v42 }
  0x98   : > { %1912 = vmatprep.subr.bf16.mxu1 %v1911_v44 }
  0x99   : > { %1886 = vmatpush3.bf16.msra.mxu0 %v1885_v50 }
  0x9b   : > { %1914 = vmatpush3.bf16.msra.mxu1 %v1913_v55 }
  0x9c   : > { %1916 = vmatprep.subr.bf16.mxu1 %v1915_v56  ;;  %1231 = vmatmul.mubr.f32.vlgmr.msra.gmra.mrb[6].mxu0 %v449_v59 }
  0x9f   : > { %1918 = vmatpush3.bf16.msra.mxu1 %v1917_v62 }
  0xa2   : > { %1301 = vmatmul.mubr.f32.vlgmr.msra.gmra.mrb[6].mxu1 %v475_v63 }
 0x10f   : > { %v1415_v0 = vpop.f32.mrb[0].mxu0 }
 0x110   : > { %v1416_v1 = vpop.f32.mrb[1].mxu0 }
 0x111   : > { %v1417_v2 = vadd.f32 %v1416_v1, %v1415_v0 }
 0x113   : > { %v813_v4 = vadd.f32 %v1417_v2, %v745_v3 }
 0x115   : > { %v1450_v5 = vpop.f32.mrb[0].mxu1 }
 0x116   : > { %v1451_v6 = vpop.f32.mrb[1].mxu1 }
 0x117   : > { %v1452_v7 = vadd.f32 %v1451_v6, %v1450_v5 }
 0x119   : > { %v883_v8 = vadd.f32 %v1452_v7, %v813_v4 }
 0x12f   : > { %v1485_v9 = vpop.f32.mrb[2].mxu0 }
 0x130   : > { %v1486_v10 = vpop.f32.mrb[3].mxu0 }
 0x131   : > { %v1487_v11 = vadd.f32 %v1486_v10, %v1485_v9 }
 0x133   : > { %v953_v12 = vadd.f32 %v1487_v11, %v883_v8 }
 0x135   : > { %v1520_v13 = vpop.f32.mrb[2].mxu1 }
 0x136   : > { %v1521_v14 = vpop.f32.mrb[3].mxu1 }
 0x137   : > { %v1522_v15 = vadd.f32 %v1521_v14, %v1520_v13 }
 0x139   : > { %v1023_v16 = vadd.f32 %v1522_v15, %v953_v12 }
 0x14f   : > { %v1555_v17 = vpop.f32.mrb[4].mxu0 }
 0x150   : > { %v1556_v18 = vpop.f32.mrb[5].mxu0 }
 0x151   : > { %v1557_v19 = vadd.f32 %v1556_v18, %v1555_v17 }
 0x153   : > { %v1093_v20 = vadd.f32 %v1557_v19, %v1023_v16 }
 0x155   : > { %v1590_v21 = vpop.f32.mrb[4].mxu1 }
 0x156   : > { %v1591_v22 = vpop.f32.mrb[5].mxu1 }
 0x157   : > { %v1592_v23 = vadd.f32 %v1591_v22, %v1590_v21 }
 0x159   : > { %v1163_v24 = vadd.f32 %v1592_v23, %v1093_v20 }
 0x16f   : > { %v1625_v25 = vpop.f32.mrb[6].mxu0 }
 0x170   : > { %v1626_v26 = vpop.f32.mrb[7].mxu0 }
 0x171   : > { %v1627_v27 = vadd.f32 %v1626_v26, %v1625_v25 }
 0x173   : > { %v1233_v28 = vadd.f32 %v1627_v27, %v1163_v24 }
 0x175   : > { %v1660_v29 = vpop.f32.mrb[6].mxu1 }
 0x176   : > { %v1661_v30 = vpop.f32.mrb[7].mxu1 }
 0x177   : > { %v1662_v31 = vadd.f32 %v1661_v30, %v1660_v29 }
 0x179   : > { %v1303_v32 = vadd.f32 %v1662_v31, %v1233_v28 }
 0x17b   : > { %1306 = vst [vmem:[%s162_s9] sm:$0x1] %v1303_v32 }
 0x17c   : > { %1972 = shalt.err (!%p1969_p3)
}
 0x17d   : > { %s1973_s7 = scalar_lea.hbm %s3122_s30, 16  ;;  %s1977_s17 = scalar_lea.hbm %s3167_s3, 32 }
 0x17e   : > { %p1974_p4 = scmp.ne.s32.totalorder %s3122_s30, %s1973_s7  ;;  %p1978_p9 = scmp.lt.u32.totalorder %s3122_s30, %s3167_s3 }
 0x17f   : > { %p1979_p10 = scmp.lt.u32.totalorder %s1977_s17, %s1973_s7  ;;  %p1981_p12 = scmp.lt.u32.totalorder %s1973_s7, %s3122_s30 }
 0x180   : > { %p1975_p7 = pnand %p1974_p4, %p2082_p5 }
 0x181   : > { %p1980_p11 = por %p1979_p10, %p1978_p9 }
 0x182   : > { %p1976_p8 = pneg %p1975_p7 }
 0x183   : > { %p1982_p13 = por %p1981_p12, %p1980_p11 }
 0x185   : > { %p1983_p0 = pnand %p1982_p13, %p1976_p8 }
 0x187   : > { %1986 = shalt.err (!%p1983_p0)
}
 0x188   : > { %1920 = dma.vmem_to_hbm [thread:$0]  (%p2082_p5), %s3124_s28, 16, %s3122_s30, %s1308_s4  }
 0x189 PF: > { %p1926_p1 = scmp.ge.s32.totalorder %s2021_s15, 2  ;;  %s1332_s25 = sand.u32 1, %s2009_s12  }
 0x18a   : > { %s1333_s26 = scalar_lea.sflag [#allocation3], %s1332_s25 }
 0x18b   : > { %p1923_p2 = pnand %p1926_p1, %p2086_p6 }
 0x18d   : > { %2004 = dma.done.wait (!%p1923_p2), %s1333_s26, 16  }
 0x18e   : > { %2006 = vsyncadd (!%p1923_p2), %s1333_s26, 4294967280  ;;  %p13_p3 = scmp.ge.s32.totalorder %s2069_s18, 4   ;;  %s3170_s12 = smov %s2013_s13 }
 0x18f   : > { %s3171_s13 = smov %s2017_s14  ;;  %s3172_s14 = smov %s2080_s21 }
 0x190   : > { %s3173_s15 = smov %s2069_s18  ;;  %15 = sbr.rel (!%p13_p3) target bundleno = 3 (0x3), region = 67 }
 0x197   :  { %1337 = vsyncpa [#allocation3], 1 }
 0x198   :  { %1339 = vsyncpa [#allocation3 + $0x1], 1 }

</bundles_post_ra>
